<compile_context>
chip_gen: v5e
topology: v5e:2x2
jax: 0.10.0
libtpu: 0.0.40
codegen_flags: <defaults>
</compile_context>

<pallas_src>
import jax
import jax.numpy as jnp
from jax.experimental import pallas as pl
from jax.experimental.pallas import tpu as pltpu

N_FREQ = 5
N_CHAN = 62
D_IN = N_FREQ * N_CHAN  # 310


def _leaky_relu(x, slope=0.01):
    return jnp.where(x > 0, x, slope * x)


# ---------------------------------------------------------------------------
# Fused EmotionAttention kernel (operates on a (TILE_N, 310) batch tile).
# ---------------------------------------------------------------------------
def _emotion_attention_kernel(
        x_ref,                      # (TN, 310) f32   flat input tile
        pf_ref,                     # (310, 5)  f32   band-average matrix (Bf.T / 62)
        bf_ref,                     # (5, 310)  f32   band one-hot (broadcast att1 -> 310)
        tc_ref,                     # (62, 310) f32   channel tiling (tile att2 -> 310)
        w1f_ref, w2f_ref,           # (5, 32), (32, 5)    freq ChannelAttentionMPL (no bias)
        w1c_ref, w2c_ref,           # (62, 32), (32, 62)  chan ChannelAttentionMPL (no bias)
        wa_ref, ba_ref,             # (310, 256) mm_dtype, (1, 256) f32
        wb_ref, bb_ref,             # (256, 128) mm_dtype, (1, 128) f32
        wc_ref, bc_ref,             # (128, 64)  mm_dtype, (1, 64)  f32
        feat_ref,                   # out: (TN, 64)
        att1_ref,                   # out: (TN, 5)
        att2_ref):                  # out: (TN, 62)
    x = x_ref[...]                  # (TN, 310)
    tn = x.shape[0]
    mm_dtype = wa_ref.dtype

    def att_mlp(p, w1, w2):         # fc2(relu(fc1(p))) — shared by stacked avg/max rows
        h = jnp.maximum(jnp.dot(p, w1, preferred_element_type=jnp.float32), 0.0)
        return jnp.dot(h, w2, preferred_element_type=jnp.float32)

    # ---- frequency_mix: ChannelAttentionMPL(in_planes=5), pooling over 62 ----
    avg_f = jnp.dot(x, pf_ref[...], preferred_element_type=jnp.float32)    # (TN, 5)
    max_f = jnp.concatenate(
        [x[:, f * N_CHAN:(f + 1) * N_CHAN].max(axis=1, keepdims=True)
         for f in range(N_FREQ)], axis=1)                                  # (TN, 5)
    o1 = att_mlp(jnp.concatenate([avg_f, max_f], axis=0),
                 w1f_ref[...], w2f_ref[...])                               # (2TN, 5)
    att1 = jax.nn.sigmoid(o1[:tn] + o1[tn:])                               # (TN, 5)

    # out1 = x + att1*x, kept lane-dense: broadcast att1 across its band via
    # a tiny constant matmul instead of 5 per-band lane broadcasts.
    s1 = jnp.dot(att1, bf_ref[...], preferred_element_type=jnp.float32)    # (TN, 310)
    out1 = x * (1.0 + s1)                                                  # (TN, 310)

    # ---- channel_mix: ChannelAttentionMPL(in_planes=62), pooling over 5 ----
    o1b = [out1[:, f * N_CHAN:(f + 1) * N_CHAN] for f in range(N_FREQ)]    # 5 x (TN, 62)
    avg_c = (o1b[0] + o1b[1] + o1b[2] + o1b[3] + o1b[4]) * (1.0 / N_FREQ)
    max_c = o1b[0]
    for f in range(1, N_FREQ):
        max_c = jnp.maximum(max_c, o1b[f])
    o2 = att_mlp(jnp.concatenate([avg_c, max_c], axis=0),
                 w1c_ref[...], w2c_ref[...])                               # (2TN, 62)
    att2 = jax.nn.sigmoid(o2[:tn] + o2[tn:])                               # (TN, 62)

    # ---- out2 + residual (flat):  out1*(1+att2_chan) + x  (one 310-wide FMA)
    s2 = jnp.dot(att2, tc_ref[...], preferred_element_type=jnp.float32)    # (TN, 310)
    xs = out1 * (1.0 + s2) + x                                             # (TN, 310)

    # ---- 310 -> 256 -> 128 -> 64 MLP (bf16 operands, f32 accumulation) ----
    h = _leaky_relu(jnp.dot(xs.astype(mm_dtype), wa_ref[...],
                            preferred_element_type=jnp.float32) + ba_ref[...])
    h = _leaky_relu(jnp.dot(h.astype(mm_dtype), wb_ref[...],
                            preferred_element_type=jnp.float32) + bb_ref[...])
    h = _leaky_relu(jnp.dot(h.astype(mm_dtype), wc_ref[...],
                            preferred_element_type=jnp.float32) + bc_ref[...])

    feat_ref[...] = h
    att1_ref[...] = att1
    att2_ref[...] = att2


# ---------------------------------------------------------------------------
# Wrapper
# ---------------------------------------------------------------------------
def emotion_attention_forward(data, params, *, tile_n=1024, use_bf16=True):
    """EmotionAttention.forward: returns (feat (N,64), [att1 (N,5,1), att2 (N,62,1)])."""
    n = data.shape[0]
    x = data.reshape(n, -1).astype(jnp.float32)        # accept (N,310) or (N,5,62)

    # Batch tile: big enough to amortize per-step overhead, small enough to
    # stay well inside the default scoped-VMEM budget on v5e/v6e/v7x.
    tn = n if n <= tile_n else tile_n
    grid = (pl.cdiv(n, tn),)

    # Constant broadcast / pooling matrices (tiny; resident in VMEM).
    j = jnp.arange(D_IN)
    bf = (j[None, :] // N_CHAN == jnp.arange(N_FREQ)[:, None]).astype(jnp.float32)  # (5, 310)
    tc = (j[None, :] % N_CHAN == jnp.arange(N_CHAN)[:, None]).astype(jnp.float32)   # (62, 310)
    pf = bf.T * (1.0 / N_CHAN)                                                      # (310, 5)

    mm_dtype = jnp.bfloat16 if use_bf16 else jnp.float32
    wa = params["wa"].astype(mm_dtype)
    wb = params["wb"].astype(mm_dtype)
    wc = params["wc"].astype(mm_dtype)

    const_spec = lambda shape: pl.BlockSpec(shape, lambda i: (0,) * len(shape))

    feat, att1, att2 = pl.pallas_call(
        _emotion_attention_kernel,
        out_shape=(jax.ShapeDtypeStruct((n, 64), jnp.float32),
                   jax.ShapeDtypeStruct((n, N_FREQ), jnp.float32),
                   jax.ShapeDtypeStruct((n, N_CHAN), jnp.float32)),
        grid=grid,
        in_specs=[
            pl.BlockSpec((tn, D_IN), lambda i: (i, 0)),      # x (batch-tiled)
            const_spec((D_IN, N_FREQ)),                      # pf
            const_spec((N_FREQ, D_IN)),                      # bf
            const_spec((N_CHAN, D_IN)),                      # tc
            const_spec((N_FREQ, 32)),                        # w1f
            const_spec((32, N_FREQ)),                        # w2f
            const_spec((N_CHAN, 32)),                        # w1c
            const_spec((32, N_CHAN)),                        # w2c
            const_spec((D_IN, 256)),                         # wa
            const_spec((1, 256)),                            # ba
            const_spec((256, 128)),                          # wb
            const_spec((1, 128)),                            # bb
            const_spec((128, 64)),                           # wc
            const_spec((1, 64)),                             # bc
        ],
        out_specs=(pl.BlockSpec((tn, 64), lambda i: (i, 0)),
                   pl.BlockSpec((tn, N_FREQ), lambda i: (i, 0)),
                   pl.BlockSpec((tn, N_CHAN), lambda i: (i, 0))),
        compiler_params=pltpu.CompilerParams(
            dimension_semantics=("parallel",)),              # shards over 2 TCs on v7x
    )(x, pf, bf, tc,
      params["w1f"], params["w2f"], params["w1c"], params["w2c"],
      wa, params["ba"], wb, params["bb"], wc, params["bc"])

    # Match PyTorch attention-weight shapes (N, 5, 1) / (N, 62, 1): pure reshapes.
    return feat, [att1[:, :, None], att2[:, :, None]]


def init_params(key):
    keys = jax.random.split(key, 10)

    def nrm(k, shape, scale):
        return (scale * jax.random.normal(k, shape)).astype(jnp.float32)

    return {
        # ChannelAttentionMPL(in_planes=5): Conv1d(5,32,1)/Conv1d(32,5,1), no bias
        "w1f": nrm(keys[0], (N_FREQ, 32), 0.3),
        "w2f": nrm(keys[1], (32, N_FREQ), 0.3),
        # ChannelAttentionMPL(in_planes=62)
        "w1c": nrm(keys[2], (N_CHAN, 32), 0.1),
        "w2c": nrm(keys[3], (32, N_CHAN), 0.1),
        # module: Linear(310,256) -> Linear(256,128) -> Linear(128,64)
        "wa": nrm(keys[4], (D_IN, 256), 0.05),
        "ba": nrm(keys[5], (1, 256), 0.05),
        "wb": nrm(keys[6], (256, 128), 0.05),
        "bb": nrm(keys[7], (1, 128), 0.05),
        "wc": nrm(keys[8], (128, 64), 0.05),
        "bc": nrm(keys[9], (1, 64), 0.05),
    }


def ref_forward(data, params):
    """Pure-JAX (f32) reference mirroring the PyTorch eval-mode forward."""
    n = data.shape[0]
    x3 = data.reshape(n, N_FREQ, N_CHAN)

    def att_mlp(p, w1, w2):
        return jnp.maximum(p @ w1, 0.0) @ w2

    avg_f = x3.mean(axis=2)
    max_f = x3.max(axis=2)
    att1 = jax.nn.sigmoid(att_mlp(avg_f, params["w1f"], params["w2f"])
                          + att_mlp(max_f, params["w1f"], params["w2f"]))
    out1 = x3 + att1[:, :, None] * x3
    avg_c = out1.mean(axis=1)
    max_c = out1.max(axis=1)
    att2 = jax.nn.sigmoid(att_mlp(avg_c, params["w1c"], params["w2c"])
                          + att_mlp(max_c, params["w1c"], params["w2c"]))
    out2 = out1 + att2[:, None, :] * out1
    flat = out2.reshape(n, D_IN) + data.reshape(n, D_IN)
    h = jax.nn.leaky_relu(flat @ params["wa"] + params["ba"][0], 0.01)
    h = jax.nn.leaky_relu(h @ params["wb"] + params["bb"][0], 0.01)
    feat = jax.nn.leaky_relu(h @ params["wc"] + params["bc"][0], 0.01)
    return feat, att1, att2


if __name__ == "__main__":
    key = jax.random.PRNGKey(0)
    k_x, k_p = jax.random.split(key)
    N = 16                                           # small batch for the self-test
    data = jax.random.normal(k_x, (N, D_IN), dtype=jnp.float32)
    params = init_params(k_p)

    feat, atts = emotion_attention_forward(data, params)
    feat = jax.block_until_ready(feat)

    feat_ref, att1_ref, att2_ref = ref_forward(data, params)
    assert feat.shape == (N, 64)
    assert atts[0].shape == (N, N_FREQ, 1) and atts[1].shape == (N, N_CHAN, 1)
    # attention weights are computed fully in f32 -> tight-ish tolerance
    assert jnp.allclose(atts[0][..., 0], att1_ref, atol=1e-2, rtol=1e-2)
    assert jnp.allclose(atts[1][..., 0], att2_ref, atol=1e-2, rtol=1e-2)
    # MLP chain uses bf16 operands with f32 accumulation -> relaxed tolerance
    assert jnp.allclose(feat, feat_ref, atol=3e-2, rtol=3e-2)

    print("KERNEL_OK")
</pallas_src>

<mosaic_0001>
module attributes {stable_mosaic.version = 11 : i64} {
  func.func @_emotion_attention_kernel(%arg0: i32, %arg1: memref<16x310xf32, #tpu.memory_space<vmem>>, %arg2: memref<310x5xf32, #tpu.memory_space<vmem>>, %arg3: memref<5x310xf32, #tpu.memory_space<vmem>>, %arg4: memref<62x310xf32, #tpu.memory_space<vmem>>, %arg5: memref<5x32xf32, #tpu.memory_space<vmem>>, %arg6: memref<32x5xf32, #tpu.memory_space<vmem>>, %arg7: memref<62x32xf32, #tpu.memory_space<vmem>>, %arg8: memref<32x62xf32, #tpu.memory_space<vmem>>, %arg9: memref<310x256xbf16, #tpu.memory_space<vmem>>, %arg10: memref<1x256xf32, #tpu.memory_space<vmem>>, %arg11: memref<256x128xbf16, #tpu.memory_space<vmem>>, %arg12: memref<1x128xf32, #tpu.memory_space<vmem>>, %arg13: memref<128x64xbf16, #tpu.memory_space<vmem>>, %arg14: memref<1x64xf32, #tpu.memory_space<vmem>>, %arg15: memref<16x64xf32, #tpu.memory_space<vmem>>, %arg16: memref<16x5xf32, #tpu.memory_space<vmem>>, %arg17: memref<16x62xf32, #tpu.memory_space<vmem>>) attributes {dimension_semantics = [#tpu.dimension_semantics<parallel>], iteration_bounds = array<i64: 1>, scalar_prefetch = 0 : i64, scratch_operands = 0 : i64, tpu.core_type = #tpu.core_type<tc>, window_params = [{transform_indices = @transform_0, window_bounds = array<i64: 16, 310>}, {pipeline_mode = #tpu.pipeline_mode<synchronous>, transform_indices = @transform_1, window_bounds = array<i64: 310, 5>}, {pipeline_mode = #tpu.pipeline_mode<synchronous>, transform_indices = @transform_2, window_bounds = array<i64: 5, 310>}, {pipeline_mode = #tpu.pipeline_mode<synchronous>, transform_indices = @transform_3, window_bounds = array<i64: 62, 310>}, {pipeline_mode = #tpu.pipeline_mode<synchronous>, transform_indices = @transform_4, window_bounds = array<i64: 5, 32>}, {pipeline_mode = #tpu.pipeline_mode<synchronous>, transform_indices = @transform_5, window_bounds = array<i64: 32, 5>}, {pipeline_mode = #tpu.pipeline_mode<synchronous>, transform_indices = @transform_6, window_bounds = array<i64: 62, 32>}, {pipeline_mode = #tpu.pipeline_mode<synchronous>, transform_indices = @transform_7, window_bounds = array<i64: 32, 62>}, {pipeline_mode = #tpu.pipeline_mode<synchronous>, transform_indices = @transform_8, window_bounds = array<i64: 310, 256>}, {pipeline_mode = #tpu.pipeline_mode<synchronous>, transform_indices = @transform_9, window_bounds = array<i64: 1, 256>}, {pipeline_mode = #tpu.pipeline_mode<synchronous>, transform_indices = @transform_10, window_bounds = array<i64: 256, 128>}, {pipeline_mode = #tpu.pipeline_mode<synchronous>, transform_indices = @transform_11, window_bounds = array<i64: 1, 128>}, {pipeline_mode = #tpu.pipeline_mode<synchronous>, transform_indices = @transform_12, window_bounds = array<i64: 128, 64>}, {pipeline_mode = #tpu.pipeline_mode<synchronous>, transform_indices = @transform_13, window_bounds = array<i64: 1, 64>}, {transform_indices = @transform_14, window_bounds = array<i64: 16, 64>}, {transform_indices = @transform_15, window_bounds = array<i64: 16, 5>}, {transform_indices = @transform_16, window_bounds = array<i64: 16, 62>}]} {
    %c0 = arith.constant 0 : index
    %c0_0 = arith.constant 0 : index
    %0 = vector.load %arg1[%c0, %c0_0] : memref<16x310xf32, #tpu.memory_space<vmem>>, vector<16x310xf32>
    %c0_1 = arith.constant 0 : index
    %c0_2 = arith.constant 0 : index
    %1 = vector.load %arg2[%c0_1, %c0_2] : memref<310x5xf32, #tpu.memory_space<vmem>>, vector<310x5xf32>
    %cst = arith.constant dense<0.000000e+00> : vector<16x5xf32>
    %2 = tpu.matmul %0, %1, %cst {dimension_numbers = #tpu.dot_dimension_numbers<[1], [0], [0], [1], [0, 0, 1, 1], [], []>} : vector<16x310xf32>, vector<310x5xf32>, vector<16x5xf32> -> vector<16x5xf32>
    %3 = vector.extract_strided_slice %0 {offsets = [0, 0], sizes = [16, 62], strides = [1, 1]} : vector<16x310xf32> to vector<16x62xf32>
    %cst_3 = arith.constant dense<0xFF800000> : vector<16xf32>
    %4 = vector.multi_reduction <maximumf>, %3, %cst_3 [1] : vector<16x62xf32> to vector<16xf32>
    %5 = vector.shape_cast %4 : vector<16xf32> to vector<16x1xf32>
    %6 = vector.extract_strided_slice %0 {offsets = [0, 62], sizes = [16, 62], strides = [1, 1]} : vector<16x310xf32> to vector<16x62xf32>
    %cst_4 = arith.constant dense<0xFF800000> : vector<16xf32>
    %7 = vector.multi_reduction <maximumf>, %6, %cst_4 [1] : vector<16x62xf32> to vector<16xf32>
    %8 = vector.shape_cast %7 : vector<16xf32> to vector<16x1xf32>
    %9 = vector.extract_strided_slice %0 {offsets = [0, 124], sizes = [16, 62], strides = [1, 1]} : vector<16x310xf32> to vector<16x62xf32>
    %cst_5 = arith.constant dense<0xFF800000> : vector<16xf32>
    %10 = vector.multi_reduction <maximumf>, %9, %cst_5 [1] : vector<16x62xf32> to vector<16xf32>
    %11 = vector.shape_cast %10 : vector<16xf32> to vector<16x1xf32>
    %12 = vector.extract_strided_slice %0 {offsets = [0, 186], sizes = [16, 62], strides = [1, 1]} : vector<16x310xf32> to vector<16x62xf32>
    %cst_6 = arith.constant dense<0xFF800000> : vector<16xf32>
    %13 = vector.multi_reduction <maximumf>, %12, %cst_6 [1] : vector<16x62xf32> to vector<16xf32>
    %14 = vector.shape_cast %13 : vector<16xf32> to vector<16x1xf32>
    %15 = vector.extract_strided_slice %0 {offsets = [0, 248], sizes = [16, 62], strides = [1, 1]} : vector<16x310xf32> to vector<16x62xf32>
    %cst_7 = arith.constant dense<0xFF800000> : vector<16xf32>
    %16 = vector.multi_reduction <maximumf>, %15, %cst_7 [1] : vector<16x62xf32> to vector<16xf32>
    %17 = vector.shape_cast %16 : vector<16xf32> to vector<16x1xf32>
    %18 = tpu.concatenate %5, %8, %11, %14, %17 in 1 : vector<16x1xf32>, vector<16x1xf32>, vector<16x1xf32>, vector<16x1xf32>, vector<16x1xf32> -> vector<16x5xf32>
    %19 = tpu.concatenate %2, %18 in 0 : vector<16x5xf32>, vector<16x5xf32> -> vector<32x5xf32>
    %c0_8 = arith.constant 0 : index
    %c0_9 = arith.constant 0 : index
    %20 = vector.load %arg5[%c0_8, %c0_9] : memref<5x32xf32, #tpu.memory_space<vmem>>, vector<5x32xf32>
    %c0_10 = arith.constant 0 : index
    %c0_11 = arith.constant 0 : index
    %21 = vector.load %arg6[%c0_10, %c0_11] : memref<32x5xf32, #tpu.memory_space<vmem>>, vector<32x5xf32>
    %cst_12 = arith.constant dense<0.000000e+00> : vector<32x32xf32>
    %22 = tpu.matmul %19, %20, %cst_12 {dimension_numbers = #tpu.dot_dimension_numbers<[1], [0], [0], [1], [0, 0, 1, 1], [], []>} : vector<32x5xf32>, vector<5x32xf32>, vector<32x32xf32> -> vector<32x32xf32>
    %cst_13 = arith.constant 0.000000e+00 : f32
    %23 = vector.broadcast %cst_13 : f32 to vector<32x32xf32>
    %24 = arith.maximumf %22, %23 : vector<32x32xf32>
    %cst_14 = arith.constant dense<0.000000e+00> : vector<32x5xf32>
    %25 = tpu.matmul %24, %21, %cst_14 {dimension_numbers = #tpu.dot_dimension_numbers<[1], [0], [0], [1], [0, 0, 1, 1], [], []>} : vector<32x32xf32>, vector<32x5xf32>, vector<32x5xf32> -> vector<32x5xf32>
    %26 = vector.extract_strided_slice %25 {offsets = [0, 0], sizes = [16, 5], strides = [1, 1]} : vector<32x5xf32> to vector<16x5xf32>
    %27 = vector.extract_strided_slice %25 {offsets = [16, 0], sizes = [16, 5], strides = [1, 1]} : vector<32x5xf32> to vector<16x5xf32>
    %28 = arith.addf %26, %27 : vector<16x5xf32>
    %29 = arith.negf %28 : vector<16x5xf32>
    %30 = math.exp %29 : vector<16x5xf32>
    %cst_15 = arith.constant 1.000000e+00 : f32
    %31 = vector.broadcast %cst_15 : f32 to vector<16x5xf32>
    %32 = arith.addf %31, %30 : vector<16x5xf32>
    %33 = arith.divf %31, %32 : vector<16x5xf32>
    %c0_16 = arith.constant 0 : index
    %c0_17 = arith.constant 0 : index
    %34 = vector.load %arg3[%c0_16, %c0_17] : memref<5x310xf32, #tpu.memory_space<vmem>>, vector<5x310xf32>
    %cst_18 = arith.constant dense<0.000000e+00> : vector<16x310xf32>
    %35 = tpu.matmul %33, %34, %cst_18 {dimension_numbers = #tpu.dot_dimension_numbers<[1], [0], [0], [1], [0, 0, 1, 1], [], []>} : vector<16x5xf32>, vector<5x310xf32>, vector<16x310xf32> -> vector<16x310xf32>
    %cst_19 = arith.constant 1.000000e+00 : f32
    %36 = vector.broadcast %cst_19 : f32 to vector<16x310xf32>
    %37 = arith.addf %36, %35 : vector<16x310xf32>
    %38 = arith.mulf %0, %37 : vector<16x310xf32>
    %39 = vector.extract_strided_slice %38 {offsets = [0, 0], sizes = [16, 62], strides = [1, 1]} : vector<16x310xf32> to vector<16x62xf32>
    %40 = vector.extract_strided_slice %38 {offsets = [0, 62], sizes = [16, 62], strides = [1, 1]} : vector<16x310xf32> to vector<16x62xf32>
    %41 = vector.extract_strided_slice %38 {offsets = [0, 124], sizes = [16, 62], strides = [1, 1]} : vector<16x310xf32> to vector<16x62xf32>
    %42 = vector.extract_strided_slice %38 {offsets = [0, 186], sizes = [16, 62], strides = [1, 1]} : vector<16x310xf32> to vector<16x62xf32>
    %43 = vector.extract_strided_slice %38 {offsets = [0, 248], sizes = [16, 62], strides = [1, 1]} : vector<16x310xf32> to vector<16x62xf32>
    %44 = arith.addf %39, %40 : vector<16x62xf32>
    %45 = arith.addf %44, %41 : vector<16x62xf32>
    %46 = arith.addf %45, %42 : vector<16x62xf32>
    %47 = arith.addf %46, %43 : vector<16x62xf32>
    %cst_20 = arith.constant 2.000000e-01 : f32
    %48 = vector.broadcast %cst_20 : f32 to vector<16x62xf32>
    %49 = arith.mulf %47, %48 : vector<16x62xf32>
    %50 = arith.maximumf %39, %40 : vector<16x62xf32>
    %51 = arith.maximumf %50, %41 : vector<16x62xf32>
    %52 = arith.maximumf %51, %42 : vector<16x62xf32>
    %53 = arith.maximumf %52, %43 : vector<16x62xf32>
    %54 = tpu.concatenate %49, %53 in 0 : vector<16x62xf32>, vector<16x62xf32> -> vector<32x62xf32>
    %c0_21 = arith.constant 0 : index
    %c0_22 = arith.constant 0 : index
    %55 = vector.load %arg7[%c0_21, %c0_22] : memref<62x32xf32, #tpu.memory_space<vmem>>, vector<62x32xf32>
    %c0_23 = arith.constant 0 : index
    %c0_24 = arith.constant 0 : index
    %56 = vector.load %arg8[%c0_23, %c0_24] : memref<32x62xf32, #tpu.memory_space<vmem>>, vector<32x62xf32>
    %cst_25 = arith.constant dense<0.000000e+00> : vector<32x32xf32>
    %57 = tpu.matmul %54, %55, %cst_25 {dimension_numbers = #tpu.dot_dimension_numbers<[1], [0], [0], [1], [0, 0, 1, 1], [], []>} : vector<32x62xf32>, vector<62x32xf32>, vector<32x32xf32> -> vector<32x32xf32>
    %cst_26 = arith.constant 0.000000e+00 : f32
    %58 = vector.broadcast %cst_26 : f32 to vector<32x32xf32>
    %59 = arith.maximumf %57, %58 : vector<32x32xf32>
    %cst_27 = arith.constant dense<0.000000e+00> : vector<32x62xf32>
    %60 = tpu.matmul %59, %56, %cst_27 {dimension_numbers = #tpu.dot_dimension_numbers<[1], [0], [0], [1], [0, 0, 1, 1], [], []>} : vector<32x32xf32>, vector<32x62xf32>, vector<32x62xf32> -> vector<32x62xf32>
    %61 = vector.extract_strided_slice %60 {offsets = [0, 0], sizes = [16, 62], strides = [1, 1]} : vector<32x62xf32> to vector<16x62xf32>
    %62 = vector.extract_strided_slice %60 {offsets = [16, 0], sizes = [16, 62], strides = [1, 1]} : vector<32x62xf32> to vector<16x62xf32>
    %63 = arith.addf %61, %62 : vector<16x62xf32>
    %64 = arith.negf %63 : vector<16x62xf32>
    %65 = math.exp %64 : vector<16x62xf32>
    %cst_28 = arith.constant 1.000000e+00 : f32
    %66 = vector.broadcast %cst_28 : f32 to vector<16x62xf32>
    %67 = arith.addf %66, %65 : vector<16x62xf32>
    %68 = arith.divf %66, %67 : vector<16x62xf32>
    %c0_29 = arith.constant 0 : index
    %c0_30 = arith.constant 0 : index
    %69 = vector.load %arg4[%c0_29, %c0_30] : memref<62x310xf32, #tpu.memory_space<vmem>>, vector<62x310xf32>
    %cst_31 = arith.constant dense<0.000000e+00> : vector<16x310xf32>
    %70 = tpu.matmul %68, %69, %cst_31 {dimension_numbers = #tpu.dot_dimension_numbers<[1], [0], [0], [1], [0, 0, 1, 1], [], []>} : vector<16x62xf32>, vector<62x310xf32>, vector<16x310xf32> -> vector<16x310xf32>
    %cst_32 = arith.constant 1.000000e+00 : f32
    %71 = vector.broadcast %cst_32 : f32 to vector<16x310xf32>
    %72 = arith.addf %71, %70 : vector<16x310xf32>
    %73 = arith.mulf %38, %72 : vector<16x310xf32>
    %74 = arith.addf %73, %0 : vector<16x310xf32>
    %75 = arith.truncf %74 : vector<16x310xf32> to vector<16x310xbf16>
    %c0_33 = arith.constant 0 : index
    %c0_34 = arith.constant 0 : index
    %76 = vector.load %arg9[%c0_33, %c0_34] : memref<310x256xbf16, #tpu.memory_space<vmem>>, vector<310x256xbf16>
    %cst_35 = arith.constant dense<0.000000e+00> : vector<16x256xf32>
    %77 = tpu.matmul %75, %76, %cst_35 {dimension_numbers = #tpu.dot_dimension_numbers<[1], [0], [0], [1], [0, 0, 1, 1], [], []>} : vector<16x310xbf16>, vector<310x256xbf16>, vector<16x256xf32> -> vector<16x256xf32>
    %c0_36 = arith.constant 0 : index
    %c0_37 = arith.constant 0 : index
    %78 = vector.load %arg10[%c0_36, %c0_37] : memref<1x256xf32, #tpu.memory_space<vmem>>, vector<1x256xf32>
    %79 = vector.broadcast %78 : vector<1x256xf32> to vector<16x256xf32>
    %80 = arith.addf %77, %79 : vector<16x256xf32>
    %cst_38 = arith.constant 0.000000e+00 : f32
    %81 = vector.broadcast %cst_38 : f32 to vector<16x256xf32>
    %82 = arith.cmpf ogt, %80, %81 : vector<16x256xf32>
    %cst_39 = arith.constant 0.00999999977 : f32
    %83 = vector.broadcast %cst_39 : f32 to vector<16x256xf32>
    %84 = arith.mulf %83, %80 : vector<16x256xf32>
    %85 = arith.select %82, %80, %84 : vector<16x256xi1>, vector<16x256xf32>
    %86 = arith.truncf %85 : vector<16x256xf32> to vector<16x256xbf16>
    %c0_40 = arith.constant 0 : index
    %c0_41 = arith.constant 0 : index
    %87 = vector.load %arg11[%c0_40, %c0_41] : memref<256x128xbf16, #tpu.memory_space<vmem>>, vector<256x128xbf16>
    %cst_42 = arith.constant dense<0.000000e+00> : vector<16x128xf32>
    %88 = tpu.matmul %86, %87, %cst_42 {dimension_numbers = #tpu.dot_dimension_numbers<[1], [0], [0], [1], [0, 0, 1, 1], [], []>} : vector<16x256xbf16>, vector<256x128xbf16>, vector<16x128xf32> -> vector<16x128xf32>
    %c0_43 = arith.constant 0 : index
    %c0_44 = arith.constant 0 : index
    %89 = vector.load %arg12[%c0_43, %c0_44] : memref<1x128xf32, #tpu.memory_space<vmem>>, vector<1x128xf32>
    %90 = vector.broadcast %89 : vector<1x128xf32> to vector<16x128xf32>
    %91 = arith.addf %88, %90 : vector<16x128xf32>
    %cst_45 = arith.constant 0.000000e+00 : f32
    %92 = vector.broadcast %cst_45 : f32 to vector<16x128xf32>
    %93 = arith.cmpf ogt, %91, %92 : vector<16x128xf32>
    %cst_46 = arith.constant 0.00999999977 : f32
    %94 = vector.broadcast %cst_46 : f32 to vector<16x128xf32>
    %95 = arith.mulf %94, %91 : vector<16x128xf32>
    %96 = arith.select %93, %91, %95 : vector<16x128xi1>, vector<16x128xf32>
    %97 = arith.truncf %96 : vector<16x128xf32> to vector<16x128xbf16>
    %c0_47 = arith.constant 0 : index
    %c0_48 = arith.constant 0 : index
    %98 = vector.load %arg13[%c0_47, %c0_48] : memref<128x64xbf16, #tpu.memory_space<vmem>>, vector<128x64xbf16>
    %cst_49 = arith.constant dense<0.000000e+00> : vector<16x64xf32>
    %99 = tpu.matmul %97, %98, %cst_49 {dimension_numbers = #tpu.dot_dimension_numbers<[1], [0], [0], [1], [0, 0, 1, 1], [], []>} : vector<16x128xbf16>, vector<128x64xbf16>, vector<16x64xf32> -> vector<16x64xf32>
    %c0_50 = arith.constant 0 : index
    %c0_51 = arith.constant 0 : index
    %100 = vector.load %arg14[%c0_50, %c0_51] : memref<1x64xf32, #tpu.memory_space<vmem>>, vector<1x64xf32>
    %101 = vector.broadcast %100 : vector<1x64xf32> to vector<16x64xf32>
    %102 = arith.addf %99, %101 : vector<16x64xf32>
    %cst_52 = arith.constant 0.000000e+00 : f32
    %103 = vector.broadcast %cst_52 : f32 to vector<16x64xf32>
    %104 = arith.cmpf ogt, %102, %103 : vector<16x64xf32>
    %cst_53 = arith.constant 0.00999999977 : f32
    %105 = vector.broadcast %cst_53 : f32 to vector<16x64xf32>
    %106 = arith.mulf %105, %102 : vector<16x64xf32>
    %107 = arith.select %104, %102, %106 : vector<16x64xi1>, vector<16x64xf32>
    %c0_54 = arith.constant 0 : index
    %c0_55 = arith.constant 0 : index
    %108 = vector.load %arg15[%c0_54, %c0_55] : memref<16x64xf32, #tpu.memory_space<vmem>>, vector<16x64xf32>
    tpu.vector_store %arg15[%c0_54, %c0_55], %107 {strides = array<i32>} : memref<16x64xf32, #tpu.memory_space<vmem>>, vector<16x64xf32>,
    %c0_56 = arith.constant 0 : index
    %c0_57 = arith.constant 0 : index
    %109 = vector.load %arg16[%c0_56, %c0_57] : memref<16x5xf32, #tpu.memory_space<vmem>>, vector<16x5xf32>
    tpu.vector_store %arg16[%c0_56, %c0_57], %33 {strides = array<i32>} : memref<16x5xf32, #tpu.memory_space<vmem>>, vector<16x5xf32>,
    %c0_58 = arith.constant 0 : index
    %c0_59 = arith.constant 0 : index
    %110 = vector.load %arg17[%c0_58, %c0_59] : memref<16x62xf32, #tpu.memory_space<vmem>>, vector<16x62xf32>
    tpu.vector_store %arg17[%c0_58, %c0_59], %68 {strides = array<i32>} : memref<16x62xf32, #tpu.memory_space<vmem>>, vector<16x62xf32>,
    return
  }
  func.func @transform_0(%arg0: i32) -> (i32, i32) {
    %c0_i32 = arith.constant 0 : i32
    %c0_i32_0 = arith.constant 0 : i32
    return %arg0, %c0_i32 : i32, i32
  }
  func.func @transform_1(%arg0: i32) -> (i32, i32) {
    %c0_i32 = arith.constant 0 : i32
    %c0_i32_0 = arith.constant 0 : i32
    %c0_i32_1 = arith.constant 0 : i32
    return %c0_i32, %c0_i32_0 : i32, i32
  }
  func.func @transform_2(%arg0: i32) -> (i32, i32) {
    %c0_i32 = arith.constant 0 : i32
    %c0_i32_0 = arith.constant 0 : i32
    %c0_i32_1 = arith.constant 0 : i32
    return %c0_i32, %c0_i32_0 : i32, i32
  }
  func.func @transform_3(%arg0: i32) -> (i32, i32) {
    %c0_i32 = arith.constant 0 : i32
    %c0_i32_0 = arith.constant 0 : i32
    %c0_i32_1 = arith.constant 0 : i32
    return %c0_i32, %c0_i32_0 : i32, i32
  }
  func.func @transform_4(%arg0: i32) -> (i32, i32) {
    %c0_i32 = arith.constant 0 : i32
    %c0_i32_0 = arith.constant 0 : i32
    %c0_i32_1 = arith.constant 0 : i32
    return %c0_i32, %c0_i32_0 : i32, i32
  }
  func.func @transform_5(%arg0: i32) -> (i32, i32) {
    %c0_i32 = arith.constant 0 : i32
    %c0_i32_0 = arith.constant 0 : i32
    %c0_i32_1 = arith.constant 0 : i32
    return %c0_i32, %c0_i32_0 : i32, i32
  }
  func.func @transform_6(%arg0: i32) -> (i32, i32) {
    %c0_i32 = arith.constant 0 : i32
    %c0_i32_0 = arith.constant 0 : i32
    %c0_i32_1 = arith.constant 0 : i32
    return %c0_i32, %c0_i32_0 : i32, i32
  }
  func.func @transform_7(%arg0: i32) -> (i32, i32) {
    %c0_i32 = arith.constant 0 : i32
    %c0_i32_0 = arith.constant 0 : i32
    %c0_i32_1 = arith.constant 0 : i32
    return %c0_i32, %c0_i32_0 : i32, i32
  }
  func.func @transform_8(%arg0: i32) -> (i32, i32) {
    %c0_i32 = arith.constant 0 : i32
    %c0_i32_0 = arith.constant 0 : i32
    %c0_i32_1 = arith.constant 0 : i32
    return %c0_i32, %c0_i32_0 : i32, i32
  }
  func.func @transform_9(%arg0: i32) -> (i32, i32) {
    %c0_i32 = arith.constant 0 : i32
    %c0_i32_0 = arith.constant 0 : i32
    %c0_i32_1 = arith.constant 0 : i32
    return %c0_i32, %c0_i32_0 : i32, i32
  }
  func.func @transform_10(%arg0: i32) -> (i32, i32) {
    %c0_i32 = arith.constant 0 : i32
    %c0_i32_0 = arith.constant 0 : i32
    %c0_i32_1 = arith.constant 0 : i32
    return %c0_i32, %c0_i32_0 : i32, i32
  }
  func.func @transform_11(%arg0: i32) -> (i32, i32) {
    %c0_i32 = arith.constant 0 : i32
    %c0_i32_0 = arith.constant 0 : i32
    %c0_i32_1 = arith.constant 0 : i32
    return %c0_i32, %c0_i32_0 : i32, i32
  }
  func.func @transform_12(%arg0: i32) -> (i32, i32) {
    %c0_i32 = arith.constant 0 : i32
    %c0_i32_0 = arith.constant 0 : i32
    %c0_i32_1 = arith.constant 0 : i32
    return %c0_i32, %c0_i32_0 : i32, i32
  }
  func.func @transform_13(%arg0: i32) -> (i32, i32) {
    %c0_i32 = arith.constant 0 : i32
    %c0_i32_0 = arith.constant 0 : i32
    %c0_i32_1 = arith.constant 0 : i32
    return %c0_i32, %c0_i32_0 : i32, i32
  }
  func.func @transform_14(%arg0: i32) -> (i32, i32) {
    %c0_i32 = arith.constant 0 : i32
    %c0_i32_0 = arith.constant 0 : i32
    return %arg0, %c0_i32 : i32, i32
  }
  func.func @transform_15(%arg0: i32) -> (i32, i32) {
    %c0_i32 = arith.constant 0 : i32
    %c0_i32_0 = arith.constant 0 : i32
    return %arg0, %c0_i32 : i32, i32
  }
  func.func @transform_16(%arg0: i32) -> (i32, i32) {
    %c0_i32 = arith.constant 0 : i32
    %c0_i32_0 = arith.constant 0 : i32
    return %arg0, %c0_i32 : i32, i32
  }
}

</mosaic_0001>

<bundles_post_ra>
// kernel: tpu_custom_call.1
= control target key start
LH: loop header
LB: loop body
LE: loop exit
PB: predicated region body
PF: predicated region fallthrough
CT: control target
= control target key end

     0   :  { %s2756_s0 = inlined_call_operand.hbm [shape: f32[16,310], index: 0, kind: input, shape index: {}]   ;;  %s2757_s1 = inlined_call_operand.vmem [shape: f32[310,5], index: 1, kind: input, shape index: {}]   ;;  %s2758_s2 = inlined_call_operand.hbm [shape: f32[5,310], index: 2, kind: input, shape index: {}]   ;;  %s2759_s3 = inlined_call_operand.hbm [shape: f32[62,310], index: 3, kind: input, shape index: {}]   ;;  %s2760_s4 = inlined_call_operand.vmem [shape: f32[5,32], index: 4, kind: input, shape index: {}]   ;;  %s2761_s5 = inlined_call_operand.vmem [shape: f32[32,5], index: 5, kind: input, shape index: {}]   ;;  %s2762_s6 = inlined_call_operand.vmem [shape: f32[62,32], index: 6, kind: input, shape index: {}]   ;;  %s2763_s7 = inlined_call_operand.vmem [shape: f32[32,62], index: 7, kind: input, shape index: {}]   ;;  %s2764_s8 = inlined_call_operand.vmem [shape: bf16[310,256], index: 8, kind: input, shape index: {}]   ;;  %s2765_s9 = inlined_call_operand.vmem [shape: f32[1,256], index: 9, kind: input, shape index: {}]   ;;  %s2766_s10 = inlined_call_operand.vmem [shape: bf16[256,128], index: 10, kind: input, shape index: {}]   ;;  %s2767_s11 = inlined_call_operand.vmem [shape: f32[1,128], index: 11, kind: input, shape index: {}]   ;;  %s2768_s12 = inlined_call_operand.vmem [shape: bf16[128,64], index: 12, kind: input, shape index: {}]   ;;  %s2769_s13 = inlined_call_operand.vmem [shape: f32[1,64], index: 13, kind: input, shape index: {}]   ;;  %s2770_s14 = inlined_call_operand.hbm [shape: f32[16,64], index: 14, kind: output, shape index: {0}]   ;;  %s2771_s15 = inlined_call_operand.vmem [shape: f32[16,5], index: 15, kind: output, shape index: {1}]   ;;  %s2772_s16 = inlined_call_operand.hbm [shape: f32[16,62], index: 16, kind: output, shape index: {2}]  }
   0x1   :  { %2773 = sst [smem:[#allocation15_spill]] %s2756_s0 }
   0x2   :  { %22 = vsyncpa [#allocation3], 0 }
   0x3   :  { %23 = vsyncpa [#allocation6], 0 }
   0x4   :  { %24 = vsyncpa [#allocation4], 0  ;;  %s46_s23 = sshll.u32 %s2758_s2, 4  ;;  %s47_s23 = int_to_ptr.hbm [resolvable:$true] %s46_s23 }
   0x5   :  { %25 = vsyncpa [#allocation10], 0  ;;  %s2005_s24 = smov [#allocation5]   ;;  %s2774_s28 = sld [smem:[#allocation15_spill]] }
   0x6   :  { %s48_s25 = sshll.u32 %s2005_s24, 4  ;;  %s2006_s30 = smov [#allocation2]   ;;  %s49_s25 = int_to_ptr.vmem [resolvable:$true] %s48_s25 }
   0x7   :  { %51 = dma.hbm_to_vmem [thread:$0]  %s47_s23, 384, %s49_s25, [#allocation6]  }
   0x8   :  { %s32_s0 = sshll.u32 %s2006_s30, 4  ;;  %s2007_s17 = smov 384   ;;  %s33_s0 = int_to_ptr.vmem [resolvable:$true] %s32_s0 }
   0x9   :  { %s2008_s18 = smov 24   ;;  %s56_s2 = sshll.u32 %s2759_s3, 4  ;;  %s57_s2 = int_to_ptr.hbm [resolvable:$true] %s56_s2 }
   0xa   :  { %s2009_s21 = smov [#allocation7]  }
   0xb   :  { %s30_s29 = sshll.u32 %s2774_s28, 4  ;;  %s58_s22 = sshll.u32 %s2009_s21, 4  ;;  %s31_s29 = int_to_ptr.hbm [resolvable:$true] %s30_s29  ;;  %s59_s22 = int_to_ptr.vmem [resolvable:$true] %s58_s22 }
   0xc   :  { %38 = dma.hbm_to_vmem [thread:$0]  %s31_s29, 768, %s33_s0, [#allocation3], %s2007_s17, %s2007_s17, %s2008_s18  }
   0xd   :  { %64 = dma.hbm_to_vmem [thread:$0]  %s57_s2, 3072, %s59_s22, [#allocation6], %s2007_s17, %s2007_s17, %s2008_s18  }
   0xe   :  { %1997 = dma.done.wait [#allocation3], 768  }
   0xf   :  { %1998 = vsyncadd [#allocation3], 4294966528 }
  0x10   :  { %1999 = dma.done.wait [#allocation6], 3456  }
  0x11   :  { %2000 = vsyncadd [#allocation6], 4294963840  ;;  %v119_v0 = vld [vmem:[%s2757_s1 + $0x78] sm:$0xff]  ;;  %v118_v2 = vld [vmem:[%s2757_s1 + $0x70] sm:$0xff]  ;;  %vm150_vm0 = vcmask 1045504   ;;  %vm223_vm1 = vcmask 506880  }
  0x12   :  { %v135_v1 = vld [vmem:[%s2757_s1 + $0xf8] sm:$0xff]  ;;  %154 = vmatpush.msra.mxu0 %v119_v0  ;;  %v134_v3 = vld [vmem:[%s2757_s1 + $0xf0] sm:$0xff]  ;;  %v117_v4 = vld [vmem:[%s2757_s1 + $0x68] sm:$0xff]  ;;  %vm249_vm2 = vcmask 982480   ;;  %vm237_vm3 = vcmask 1048544   ;;  %vm239_vm4 = vcmask 474112  }
  0x13   :  { %177 = vmatpush.msra.mxu1 %v135_v1  ;;  %v133_v5 = vld [vmem:[%s2757_s1 + $0xe8] sm:$0xff]  ;;  %v116_v6 = vld [vmem:[%s2757_s1 + $0x60] sm:$0xff]  ;;  %v142_v8 = vld [vmem:[%s2757_s1 + $0x130] sm:$0x3f]  ;;  %vm143_vm5 = vcmask 441344   ;;  %vm230_vm6 = vcmask 1015280  }
  0x14   :  { %155 = vmatpush.msra.mxu0 %v118_v2  ;;  %v132_v7 = vld [vmem:[%s2757_s1 + $0xe0] sm:$0xff]  ;;  %v115_v9 = vld [vmem:[%s2757_s1 + $0x58] sm:$0xff]  ;;  %1486 = vmatpush.msk.msra.mxu2 %vm150_vm0, %v142_v8  ;;  %v141_v11 = vld [vmem:[%s2757_s1 + $0x128] sm:$0xff]  ;;  %vm256_vm7 = vcmask 1048512   ;;  %vm297_vm8 = vcmask 1044480   ;;  %vm284_vm9 = vcmask 39936  }
  0x15   :  { %178 = vmatpush.msra.mxu1 %v134_v3  ;;  %v131_v10 = vld [vmem:[%s2757_s1 + $0xd8] sm:$0xff]  ;;  %v140_v12 = vld [vmem:[%s2757_s1 + $0x120] sm:$0xff]  ;;  %v114_v13 = vld [vmem:[%s2757_s1 + $0x50] sm:$0xff]  ;;  %vm267_vm10 = vcmask 7168   ;;  %vm270_vm11 = vcmask 15360   ;;  %vm273_vm12 = vcmask 23552  }
  0x16   :  { %156 = vmatpush.msra.mxu0 %v117_v4  ;;  %v130_v14 = vld [vmem:[%s2757_s1 + $0xd0] sm:$0xff]  ;;  %210 = vmatpush.msra.mxu2 %v141_v11  ;;  %v139_v15 = vld [vmem:[%s2757_s1 + $0x118] sm:$0xff]  ;;  %v113_v16 = vld [vmem:[%s2757_s1 + $0x48] sm:$0xff]  ;;  %vm276_vm13 = vcmask 31744   ;;  %vm334_vm14 = vcmask 261120   ;;  %s2010_s27 = smov 8  }
  0x17   :  { %179 = vmatpush.msra.mxu1 %v133_v5  ;;  %v129_v17 = vld [vmem:[%s2757_s1 + $0xc8] sm:$0xff]  ;;  %v138_v18 = vld [vmem:[%s2757_s1 + $0x110] sm:$0xff]  ;;  %v112_v19 = vld [vmem:[%s2757_s1 + $0x40] sm:$0xff]  ;;  %s2011_s28 = smov 70   ;;  %s2012_s3 = smov 4  }
  0x18   :  { %157 = vmatpush.msra.mxu0 %v116_v6  ;;  %211 = vmatpush.msra.mxu2 %v140_v12  ;;  %v128_v20 = vld [vmem:[%s2757_s1 + $0xc0] sm:$0xff]  ;;  %v111_v21 = vld [vmem:[%s2757_s1 + $0x38] sm:$0xff]  ;;  %v137_v22 = vld [vmem:[%s2757_s1 + $0x108] sm:$0xff]  ;;  %s1465_s20 = sshll.u32 %s2772_s16, 4  ;;  %s2015_s2 = smov 128   ;;  %s1466_s20 = int_to_ptr.hbm [resolvable:$true] %s1465_s20 }
  0x19   :  { %180 = vmatpush.msra.mxu1 %v132_v7  ;;  %v2181_v23 = vld [vmem:[#allocation2] sm:$0xff]  ;;  %v127_v24 = vld [vmem:[%s2757_s1 + $0xb8] sm:$0xff]  ;;  %v2188_v26 = vld [vmem:[#allocation2 + $0x8] sm:$0xff]  ;;  %s1450_s23 = sshll.u32 %s2770_s14, 4  ;;  %s1451_s23 = int_to_ptr.hbm [resolvable:$true] %s1450_s23 }
  0x1a   :  { %158 = vmatpush.msra.mxu0 %v115_v9  ;;  %212 = vmatpush.msra.mxu2 %v139_v15  ;;  %v224_v25 = vsel %vm223_vm1, %v2181_v23, -inf  ;;  %v2190_v27 = vld [vmem:[#allocation2 + $0x18] sm:$0xff]  ;;  %v136_v28 = vld [vmem:[%s2757_s1 + $0x100] sm:$0xff]  ;;  %v250_v29 = vsel %vm249_vm2, %v2188_v26, -inf  ;;  %v110_v30 = vld [vmem:[%s2757_s1 + $0x30] sm:$0xff]  ;;  %v238_v36 = vsel %vm237_vm3, %v2181_v23, -inf }
  0x1b   :  { %181 = vmatpush.msra.mxu1 %v131_v10  ;;  %v126_v31 = vld [vmem:[%s2757_s1 + $0xb0] sm:$0xff]  ;;  %225 = vmax.xlane.f32.xlu0 %v224_v25  ;;  %v227_v33 = vsel %vm223_vm1, %v2190_v27, -inf  ;;  %v109_v34 = vld [vmem:[%s2757_s1 + $0x28] sm:$0xff]  ;;  %v240_v37 = vsel %vm239_vm4, %v2188_v26, -inf  ;;  %v108_v38 = vld [vmem:[%s2757_s1 + $0x20] sm:$0xff]  ;;  %v231_v40 = vsel %vm230_vm6, %v2181_v23, -inf }
  0x1c   :  { %159 = vmatpush.msra.mxu0 %v114_v13  ;;  %213 = vmatpush.msra.mxu2 %v138_v18  ;;  %v2203_v32 = vld [vmem:[#allocation2 + $0x10] sm:$0xff]  ;;  %v125_v35 = vld [vmem:[%s2757_s1 + $0xa8] sm:$0xff]  ;;  %v124_v39 = vld [vmem:[%s2757_s1 + $0xa0] sm:$0xff]  ;;  %v257_v41 = vsel %vm256_vm7, %v2188_v26, -inf  ;;  %v241_v45 = vmax.f32 %v238_v36, %v240_v37  ;;  %v244_v53 = vsel %vm237_vm3, %v2190_v27, -inf  ;;  %v234_v57 = vsel %vm230_vm6, %v2190_v27, -inf }
  0x1d   :  { %182 = vmatpush.msra.mxu1 %v130_v14  ;;  %251 = vmax.xlane.f32.xlu1 %v250_v29  ;;  %v258_v42 = vsel %vm143_vm5, %v2203_v32, -inf  ;;  %v107_v43 = vld [vmem:[%s2757_s1 + $0x18] sm:$0xff]  ;;  %v106_v46 = vld [vmem:[%s2757_s1 + $0x10] sm:$0xff]  ;;  %v2243_v49 = vld [vmem:[#allocation2 + $0x28] sm:$0xff] }
  0x1e   :  { %160 = vmatpush.msra.mxu0 %v113_v16  ;;  %214 = vmatpush.msra.mxu2 %v137_v22  ;;  %v123_v44 = vld [vmem:[%s2757_s1 + $0x98] sm:$0xff]  ;;  %v122_v47 = vld [vmem:[%s2757_s1 + $0x90] sm:$0xff]  ;;  %v259_v48 = vmax.f32 %v257_v41, %v258_v42  ;;  %v105_v50 = vld [vmem:[%s2757_s1 + $0x8] sm:$0xff]  ;;  %v263_v61 = vsel %vm143_vm5, %v2243_v49, -inf }
  0x1f   :  { %183 = vmatpush.msra.mxu1 %v129_v17  ;;  %228 = vmax.xlane.f32.xlu2 %v227_v33  ;;  %v121_v51 = vld [vmem:[%s2757_s1 + $0x88] sm:$0xff]  ;;  %v2251_v52 = vld [vmem:[#allocation2 + $0x20] sm:$0xff]  ;;  %v283_v2 = vld [vmem:[%s2761_s5 + $0x18] sm:$0xff] }
  0x20   :  { %161 = vmatpush.msra.mxu0 %v112_v19  ;;  %215 = vmatpush.msra.mxu2 %v136_v28  ;;  %v245_v54 = vsel %vm239_vm4, %v2251_v52, -inf  ;;  %v104_v55 = vld [vmem:[%s2757_s1] sm:$0xff]  ;;  %v253_v59 = vsel %vm249_vm2, %v2251_v52, -inf  ;;  %v262_v60 = vsel %vm256_vm7, %v2251_v52, -inf  ;;  %v282_v3 = vld [vmem:[%s2761_s5 + $0x10] sm:$0xff]  ;;  %v281_v5 = vld [vmem:[%s2761_s5 + $0x8] sm:$0xff] }
  0x21   :  { %184 = vmatpush.msra.mxu1 %v128_v20  ;;  %1487 = vmatmul.msk.f32.vlgmr.msra.gmra.mxu2 %vm143_vm5, %v2203_v32  ;;  %v120_v56 = vld [vmem:[%s2757_s1 + $0x80] sm:$0xff]  ;;  %v246_v58 = vmax.f32 %v244_v53, %v245_v54  ;;  %v264_v62 = vmax.f32 %v262_v60, %v263_v61 }
  0x22   :  { %162 = vmatpush.msra.mxu0 %v111_v21  ;;  %v279_v63 = vld [vmem:[%s2760_s4] sm:$0x1f]  ;;  %359 = vmatpush.msrb.mxu2 %v283_v2  ;;  %s2016_s4 = smov [#allocation8]  }
  0x23   :  { %185 = vmatpush.msra.mxu1 %v127_v24  ;;  %232 = vmax.xlane.f32.xlu0 %v231_v40  ;;  %v280_v9 = vld [vmem:[%s2761_s5] sm:$0xff] }
  0x24   :  { %163 = vmatpush.msra.mxu0 %v110_v30  ;;  %1489 = vmatpush.msk.msra.mxu3 %vm297_vm8, %v279_v63 }
  0x25   :  { %186 = vmatpush.msra.mxu1 %v126_v31  ;;  %242 = vmax.xlane.f32.xlu1 %v241_v45 }
  0x26   :  { %164 = vmatpush.msra.mxu0 %v109_v34  ;;  %360 = vmatpush.msrb.mxu2 %v282_v3 }
  0x27   :  { %187 = vmatpush.msra.mxu1 %v125_v35  ;;  %260 = vmax.xlane.f32.xlu2 %v259_v48  ;;  %v418_v48 = vld [vmem:[#allocation5 + $0x10] sm:$0x1f] }
  0x28   :  { %165 = vmatpush.msra.mxu0 %v108_v38  ;;  %361 = vmatpush.msrb.mxu2 %v281_v5 }
  0x29   :  { %188 = vmatpush.msra.mxu1 %v124_v39  ;;  %1488 = vmatmul.msk.f32.gmra.mxu2 %vm143_vm5, %v2243_v49 }
  0x2a   :  { %166 = vmatpush.msra.mxu0 %v107_v43  ;;  %362 = vmatpush.msrb.mxu2 %v280_v9 }
  0x2b   :  { %189 = vmatpush.msra.mxu1 %v123_v44  ;;  %235 = vmax.xlane.f32.xlu0 %v234_v57  ;;  %v416_v44 = vld [vmem:[#allocation5] sm:$0x1f] }
  0x2c   :  { %167 = vmatpush.msra.mxu0 %v106_v46  ;;  %1500 = vmatpush.msk.msrb.mxu3 %vm297_vm8, %v416_v44  ;;  %v417_v46 = vld [vmem:[#allocation5 + $0x8] sm:$0x1f] }
  0x2d   :  { %190 = vmatpush.msra.mxu1 %v122_v47  ;;  %247 = vmax.xlane.f32.xlu1 %v246_v58 }
  0x2e   :  { %168 = vmatpush.msra.mxu0 %v105_v50 }
  0x2f   :  { %191 = vmatpush.msra.mxu1 %v121_v51  ;;  %254 = vmax.xlane.f32.xlu2 %v253_v59 }
  0x30   :  { %169 = vmatpush.msra.mxu0 %v104_v55 }
  0x31   :  { %192 = vmatpush.msra.mxu1 %v120_v56  ;;  %170 = vmatmul.f32.vlgmr.msra.gmra.mxu0 %v2181_v23 }
  0x32   :  { %193 = vmatmul.f32.vlgmr.msra.gmra.mxu1 %v2188_v26 }
  0x33   :  { %265 = vmax.xlane.f32.xlu0 %v264_v62  ;;  %1503 = vmatpush.msk.msrb.mxu1 %vm297_vm8, %v417_v46 }
  0x35   :  { %1506 = vmatpush.msk.msra.mxu1 %vm297_vm8, %v418_v48 }
  0x39   :  { %173 = vmatmul.f32.gmra.mxu0 %v2190_v27 }
  0x3a   :  { %196 = vmatmul.f32.gmra.mxu1 %v2251_v52 }
  0x8e   :  { %v226_v0 = vpop.xlane.xlu0 %225 }
  0x90   :  { %v252_v4 = vpop.xlane.xlu1 %251 }
  0x92   :  { %v229_v10 = vpop.xlane.xlu2 %228 }
  0x96   :  { %v233_v12 = vpop.xlane.xlu0 %232 }
  0x97   :  { %v268_v18 = vsel %vm267_vm10, %v226_v0, %v233_v12 }
  0x98   :  { %v243_v16 = vpop.xlane.xlu1 %242 }
  0x99   :  { %v271_v21 = vsel %vm270_vm11, %v268_v18, %v243_v16 }
  0x9a   :  { %v261_v20 = vpop.xlane.xlu2 %260  ;;  %v274_v24 = vsel %vm273_vm12, %v271_v21, %v252_v4 }
  0x9b   :  { %v277_v29 = vsel %vm276_vm13, %v274_v24, %v261_v20 }
  0x9e   :  { %v236_v22 = vpop.xlane.xlu0 %235 }
  0x9f   :  { %v269_v25 = vsel %vm267_vm10, %v229_v10, %v236_v22 }
  0xa0   :  { %v248_v28 = vpop.xlane.xlu1 %247 }
  0xa1   :  { %v272_v30 = vsel %vm270_vm11, %v269_v25, %v248_v28 }
  0xa2   :  { %v255_v31 = vpop.xlane.xlu2 %254 }
  0xa3   :  { %v275_v33 = vsel %vm273_vm12, %v272_v30, %v255_v31 }
  0xa4   :  { %v217_v1 = vpop.f32.mrf.mxu2 }
  0xa6   :  { %v266_v34 = vpop.xlane.xlu0 %265 }
  0xa7   :  { %v278_v35 = vsel %vm276_vm13, %v275_v33, %v266_v34 }
  0xac   :  { %v220_v13 = vpop.f32.mrf.mxu2 }
  0xae   :  { %v171_v6 = vpop.f32.mrf.mxu0 }
  0xaf   :  { %v194_v7 = vpop.f32.mrf.mxu1 }
  0xb0   :  { %v195_v8 = vadd.f32 %v194_v7, %v171_v6 }
  0xb2   :  { %v218_v11 = vadd.f32 %v217_v1, %v195_v8 }
  0xb4   :  { %1490 = vmatmul.msk.f32.vlgmr.msra.gmra.mxu3 %vm284_vm9, %v218_v11 }
  0xb6   :  { %v174_v14 = vpop.f32.mrf.mxu0 }
  0xb7   :  { %v197_v15 = vpop.f32.mrf.mxu1 }
  0xb8   :  { %v198_v17 = vadd.f32 %v197_v15, %v174_v14 }
  0xba   :  { %v221_v19 = vadd.f32 %v220_v13, %v198_v17 }
  0xbc   :  { %1491 = vmatmul.msk.f32.gmra.mxu3 %vm284_vm9, %v221_v19 }
  0xc4   :  { %1492 = vmatmul.msk.f32.gmra.mxu3 %vm284_vm9, %v277_v29 }
  0xcc   :  { %1493 = vmatmul.msk.f32.gmra.mxu3 %vm284_vm9, %v278_v35 }
 0x137   :  { %v318_v36 = vpop.f32.mrf.mxu3 }
 0x138   :  { %v330_v37 = vmax.f32 %v318_v36, 0.0  ;;  %v574_v36 = vld [vmem:[%s2762_s6 + $0x20] sm:$0xff] }
 0x13a   :  { %1494 = vmatmul.msk.f32.vlgmr.msrb.gmra.mxu2 %vm334_vm14, %v330_v37  ;;  %v573_v37 = vld [vmem:[%s2762_s6 + $0x18] sm:$0xff] }
 0x13f   :  { %v321_v38 = vpop.f32.mrf.mxu3 }
 0x140   :  { %v331_v39 = vmax.f32 %v321_v38, 0.0  ;;  %v572_v38 = vld [vmem:[%s2762_s6 + $0x10] sm:$0xff] }
 0x142   :  { %1495 = vmatmul.msk.f32.gmra.mxu2 %vm334_vm14, %v331_v39  ;;  %v571_v39 = vld [vmem:[%s2762_s6 + $0x8] sm:$0xff] }
 0x147   :  { %v324_v40 = vpop.f32.mrf.mxu3 }
 0x148   :  { %v332_v41 = vmax.f32 %v324_v40, 0.0  ;;  %v570_v40 = vld [vmem:[%s2762_s6] sm:$0xff] }
 0x14a   :  { %1496 = vmatmul.msk.f32.gmra.mxu2 %vm334_vm14, %v332_v41 }
 0x14f   :  { %v327_v42 = vpop.f32.mrf.mxu3 }
 0x150   :  { %v333_v43 = vmax.f32 %v327_v42, 0.0 }
 0x152   :  { %1497 = vmatmul.msk.f32.gmra.mxu2 %vm334_vm14, %v333_v43 }
 0x1bd   :  { %v364_v45 = vpop.f32.mrf.mxu2 }
 0x1c5   :  { %v367_v47 = vpop.f32.mrf.mxu2 }
 0x1cd   :  { %v370_v50 = vpop.f32.mrf.mxu2 }
 0x1ce   :  { %v376_v51 = vadd.f32 %v370_v50, %v364_v45 }
 0x1d0   :  { %v1498_v53 = vmul.f32 -1.442695, %v376_v51 }
 0x1d2   :  { %1855 = vpow2.f32 %v1498_v53  ;;  %v581_v53 = vld [vmem:[%s2763_s7 + $0x18] sm:$0xff] }
 0x1d3   :  { %654 = vmatpush.msra.mxu2 %v581_v53  ;;  %v728_v53 = vld [vmem:[#allocation7 + $0x88] sm:$0xff] }
 0x1d5   :  { %v373_v54 = vpop.f32.mrf.mxu2 }
 0x1d6   :  { %v377_v55 = vadd.f32 %v373_v54, %v367_v47  ;;  %v580_v54 = vld [vmem:[%s2763_s7 + $0x10] sm:$0xff] }
 0x1d7   :  { %655 = vmatpush.msra.mxu2 %v580_v54 }
 0x1d8   :  { %v1856_v56 = vpop.eup %1855  ;;  %v1499_v57 = vmul.f32 -1.442695, %v377_v55 }
 0x1d9   :  { %v384_v58 = vadd.f32 1.0, %v1856_v56 }
 0x1da   :  { %1857 = vpow2.f32 %v1499_v57 }
 0x1db   :  { %1859 = vrcp.f32 %v384_v58  ;;  %v397_v0 = vand.u32 2147483648, %v384_v58  ;;  %v395_v2 = vand.u32 2147483647, %v384_v58  ;;  %vm391_vm2 = vweird.f32 %v384_v58 }
 0x1dd   :  { %v398_v5 = vor.u32 1.1754944e-38, %v397_v0  ;;  %vm396_vm4 = vcmp.eq.f32.partialorder %v395_v2, 8.507059e+37 }
 0x1e0   :  { %v1858_v59 = vpop.eup %1857 }
 0x1e1   :  { %v1860_v60 = vpop.eup %1859  ;;  %v385_v61 = vadd.f32 1.0, %v1858_v59 }
 0x1e2   :  { %v387_v62 = vmul.f32 %v1860_v60, %v384_v58  ;;  %vm392_vm15 = vweird.f32 %v1860_v60  ;;  %v579_v58 = vld [vmem:[%s2763_s7 + $0x8] sm:$0xff] }
 0x1e3   :  { %1861 = vrcp.f32 %v385_v61  ;;  %vm393_vm3 = vmor %vm391_vm2, %vm392_vm15  ;;  %v412_v10 = vand.u32 2147483648, %v385_v61  ;;  %v410_v12 = vand.u32 2147483647, %v385_v61  ;;  %vm406_vm7 = vweird.f32 %v385_v61  ;;  %656 = vmatpush.msra.mxu2 %v579_v58 }
 0x1e4   :  { %v388_v63 = vsub.f32 1.0, %v387_v62 }
 0x1e5   :  { %v413_v14 = vor.u32 1.1754944e-38, %v412_v10  ;;  %vm411_vm10 = vcmp.eq.f32.partialorder %v410_v12, 8.507059e+37 }
 0x1e6   :  { %v389_v1 = vmul.f32 %v1860_v60, %v388_v63  ;;  %v578_v63 = vld [vmem:[%s2763_s7] sm:$0xff] }
 0x1e7   :  { %657 = vmatpush.msra.mxu2 %v578_v63  ;;  %v713_v63 = vld [vmem:[#allocation7 + $0x10] sm:$0xff] }
 0x1e8   :  { %v390_v3 = vadd.f32 %v1860_v60, %v389_v1 }
 0x1e9   :  { %v1862_v4 = vpop.eup %1861 }
 0x1ea   :  { %v394_v6 = vsel %vm393_vm3, %v1860_v60, %v390_v3  ;;  %v402_v7 = vmul.f32 %v1862_v4, %v385_v61  ;;  %vm407_vm6 = vweird.f32 %v1862_v4 }
 0x1eb   :  { %v399_v8 = vsel %vm396_vm4, %v398_v5, %v394_v6  ;;  %vm408_vm8 = vmor %vm406_vm7, %vm407_vm6 }
 0x1ec   :  { %1501 = vmatmul.msk.f32.vlgmr.msrb.gmra.mxu3 %vm284_vm9, %v399_v8  ;;  %1440 = vst.msk [vmem:[%s2771_s15] sm:$0xff] %vm284_vm9, %v399_v8  ;;  %1504 = vmatmul.msk.f32.vlgmr.msrb.gmra.mxu1 %vm284_vm9, %v399_v8  ;;  %v403_v9 = vsub.f32 1.0, %v402_v7 }
 0x1ee   :  { %v404_v11 = vmul.f32 %v1862_v4, %v403_v9 }
 0x1f0   :  { %v405_v13 = vadd.f32 %v1862_v4, %v404_v11 }
 0x1f2   :  { %v409_v15 = vsel %vm408_vm8, %v1862_v4, %v405_v13 }
 0x1f3   :  { %v414_v16 = vsel %vm411_vm10, %v413_v14, %v409_v15 }
 0x1f4   :  { %1502 = vmatmul.msk.f32.gmra.mxu3 %vm284_vm9, %v414_v16  ;;  %1441 = vst.msk [vmem:[%s2771_s15 + $0x8] sm:$0xff] %vm284_vm9, %v414_v16  ;;  %1505 = vmatmul.msk.f32.gmra.mxu1 %vm284_vm9, %v414_v16  ;;  %s2013_s15 = smov 66  }
 0x1fc   :  { %1507 = vmatmul.msk.f32.vlgmr.msra.gmra.mxu1 %vm284_vm9, %v399_v8 }
 0x204   :  { %1508 = vmatmul.msk.f32.gmra.mxu1 %vm284_vm9, %v414_v16  ;;  %vm553_vm9 = vcmask 64512  }
 0x269   :  { %v474_v17 = vpop.f32.mrf.mxu1 }
 0x26a   :  { %v475_v18 = vadd.f32 1.0, %v474_v17 }
 0x26c   :  { %v2321_v19 = vmul.f32 %v475_v18, %v2188_v26 }
 0x26e   :  { %545 = vrot.lane.b32.xlu1 %v2321_v19, %s2010_s27  ;;  %535 = vrot.lane.b32.xlu2 %v2321_v19, %s2011_s28 }
 0x26f   :  { %523 = vrot.lane.b32.xlu0 %v2321_v19, %s2012_s3  ;;  %v451_v20 = vpop.f32.mrf.mxu3 }
 0x270   :  { %v452_v21 = vadd.f32 1.0, %v451_v20 }
 0x271   :  { %v477_v22 = vpop.f32.mrf.mxu1 }
 0x272   :  { %v478_v24 = vadd.f32 1.0, %v477_v22  ;;  %v2328_v25 = vmul.f32 %v452_v21, %v2181_v23 }
 0x274   :  { %v2331_v26 = vmul.f32 %v478_v24, %v2251_v52 }
 0x276   :  { %521 = vrot.lane.b32.xlu2 %v2328_v25, %s2012_s3  ;;  %511 = vrot.lane.b32.xlu1 %v2328_v25, %s2013_s15 }
 0x277   :  { %527 = vrot.lane.b32.xlu0 %v2331_v26, %s2012_s3  ;;  %v454_v28 = vpop.f32.mrf.mxu3 }
 0x278   :  { %v455_v29 = vadd.f32 1.0, %v454_v28 }
 0x279   :  { %v497_v30 = vpop.f32.mrf.mxu1 }
 0x27a   :  { %v498_v31 = vadd.f32 1.0, %v497_v30  ;;  %v2337_v33 = vmul.f32 %v455_v29, %v2190_v27  ;;  %v577_v27 = vld [vmem:[%s2762_s6 + $0x38] sm:$0x3f]  ;;  %v732_v30 = vld [vmem:[#allocation7 + $0xa8] sm:$0x3f] }
 0x27b   :  { %1509 = vmatpush.msk.msra.mxu3 %vm150_vm0, %v577_v27  ;;  %1520 = vmatpush.msk.msrb.mxu0 %vm150_vm0, %v732_v30  ;;  %v730_v27 = vld [vmem:[#allocation7 + $0x98] sm:$0xff] }
 0x27c   :  { %v2340_v23 = vmul.f32 %v498_v31, %v2203_v32  ;;  %v576_v32 = vld [vmem:[%s2762_s6 + $0x30] sm:$0xff]  ;;  %v733_v31 = vld [vmem:[#allocation7 + $0xb0] sm:$0x3f] }
 0x27d   :  { %606 = vmatpush.msra.mxu3 %v576_v32  ;;  %1523 = vmatpush.msk.msrb.mxu1 %vm150_vm0, %v733_v31  ;;  %v726_v32 = vld [vmem:[#allocation7 + $0x78] sm:$0xff] }
 0x27e   :  { %525 = vrot.lane.b32.xlu1 %v2337_v33, %s2012_s3  ;;  %513 = vrot.lane.b32.xlu2 %v2337_v33, %s2013_s15 }
 0x27f   :  { %547 = vrot.lane.b32.xlu0 %v2340_v23, %s2010_s27  ;;  %782 = vmatpush.msrb.mxu1 %v730_v27  ;;  %v1790_v27 = vld [vmem:[%s2764_s8 + $0x54] sm:$0xf0] }
 0x281   :  { %v500_v52 = vpop.f32.mrf.mxu1 }
 0x282   :  { %v501_v34 = vadd.f32 1.0, %v500_v52 }
 0x284   :  { %v2347_v35 = vmul.f32 %v501_v34, %v2243_v49  ;;  %v575_v49 = vld [vmem:[%s2762_s6 + $0x28] sm:$0xff]  ;;  %v729_v34 = vld [vmem:[#allocation7 + $0x90] sm:$0xff] }
 0x285   :  { %607 = vmatpush.msra.mxu3 %v575_v49  ;;  %759 = vmatpush.msrb.mxu0 %v729_v34  ;;  %v727_v49 = vld [vmem:[#allocation7 + $0x80] sm:$0xff]  ;;  %v1791_v34 = vld [vmem:[%s2764_s8 + $0x64] sm:$0xf] }
 0x286   :  { %549 = vrot.lane.b32.xlu1 %v2331_v26, %s2010_s27  ;;  %537 = vrot.lane.b32.xlu2 %v2331_v26, %s2011_s28 }
 0x287   :  { %551 = vrot.lane.b32.xlu0 %v2347_v35, %s2010_s27  ;;  %608 = vmatpush.msra.mxu3 %v574_v36  ;;  %v723_v36 = vld [vmem:[#allocation7 + $0x60] sm:$0xff] }
 0x288   :  { %760 = vmatpush.msrb.mxu0 %v726_v32  ;;  %783 = vmatpush.msrb.mxu1 %v727_v49 }
 0x289   :  { %609 = vmatpush.msra.mxu3 %v573_v37  ;;  %v724_v37 = vld [vmem:[#allocation7 + $0x68] sm:$0xff] }
 0x28a   :  { %761 = vmatpush.msrb.mxu0 %v723_v36  ;;  %784 = vmatpush.msrb.mxu1 %v724_v37  ;;  %v1581_v36 = vld [vmem:[%s2764_s8 + $0x68] sm:$0xf0]  ;;  %v1635_v37 = vld [vmem:[%s2764_s8 + $0xd0] sm:$0xf] }
 0x28b   :  { %610 = vmatpush.msra.mxu3 %v572_v38  ;;  %v720_v38 = vld [vmem:[#allocation7 + $0x48] sm:$0xff] }
 0x28c   :  { %762 = vmatpush.msrb.mxu0 %v720_v38  ;;  %v1806_v38 = vld [vmem:[%s2764_s8 + $0xd4] sm:$0xf0] }
 0x28d   :  { %611 = vmatpush.msra.mxu3 %v571_v39  ;;  %v721_v39 = vld [vmem:[#allocation7 + $0x50] sm:$0xff] }
 0x28e   :  { %785 = vmatpush.msrb.mxu1 %v721_v39 }
 0x28f   :  { %612 = vmatpush.msra.mxu3 %v570_v40  ;;  %v717_v40 = vld [vmem:[#allocation7 + $0x30] sm:$0xff] }
 0x290   :  { %763 = vmatpush.msrb.mxu0 %v717_v40 }
 0x2c8   :  { %v536_v41 = vpop.permute.xlu2 %535 }
 0x2d0   :  { %v522_v44 = vpop.permute.xlu2 %521 }
 0x2d8   :  { %v514_v51 = vpop.permute.xlu2 %513 }
 0x2d9   :  { %v518_v61 = vadd.f32 %v514_v51, %v2337_v33  ;;  %v563_v12 = vmax.f32 %v2337_v33, %v514_v51 }
 0x2e0   :  { %v546_v42 = vpop.permute.xlu1 %545  ;;  %v538_v2 = vpop.permute.xlu2 %537 }
 0x2e1   :  { %v524_v43 = vpop.permute.xlu0 %523 }
 0x2e2   :  { %v529_v48 = vsel %vm276_vm13, %v522_v44, %v524_v43  ;;  %v714_v43 = vld [vmem:[#allocation7 + $0x18] sm:$0xff]  ;;  %v715_v44 = vld [vmem:[#allocation7 + $0x20] sm:$0xff] }
 0x2e3   :  { %764 = vmatpush.msrb.mxu0 %v714_v43  ;;  %v1788_v43 = vld [vmem:[%s2764_s8 + $0x44] sm:$0xf0] }
 0x2e8   :  { %v512_v45 = vpop.permute.xlu1 %511 }
 0x2e9   :  { %v517_v46 = vadd.f32 %v512_v45, %v2328_v25  ;;  %v528_v47 = vpop.permute.xlu0 %527  ;;  %v562_v7 = vmax.f32 %v2328_v25, %v512_v45  ;;  %v711_v45 = vld [vmem:[#allocation7] sm:$0xff] }
 0x2ea   :  { %765 = vmatpush.msrb.mxu0 %v711_v45 }
 0x2eb   :  { %v533_v50 = vadd.f32 %v529_v48, %v517_v46  ;;  %v564_v10 = vmax.f32 %v562_v7, %v529_v48  ;;  %v712_v46 = vld [vmem:[#allocation7 + $0x8] sm:$0xff]  ;;  %v731_v48 = vld [vmem:[#allocation7 + $0xa0] sm:$0xff] }
 0x2ec   :  { %v1587_v7 = vld [vmem:[%s2764_s8 + $0x70] sm:$0xf] }
 0x2ed   :  { %v541_v56 = vadd.f32 %v536_v41, %v533_v50  ;;  %v566_v11 = vmax.f32 %v564_v10, %v536_v41  ;;  %v718_v41 = vld [vmem:[#allocation7 + $0x38] sm:$0xff] }
 0x2ee   :  { %786 = vmatpush.msrb.mxu1 %v718_v41 }
 0x2f0   :  { %v526_v55 = vpop.permute.xlu1 %525  ;;  %787 = vmatpush.msrb.mxu1 %v715_v44 }
 0x2f1   :  { %v548_v57 = vpop.permute.xlu0 %547  ;;  %v530_v60 = vsel %vm276_vm13, %v526_v55, %v528_v47  ;;  %v734_v47 = vld [vmem:[#allocation7 + $0xb8] sm:$0x3f]  ;;  %v725_v55 = vld [vmem:[#allocation7 + $0x70] sm:$0xff] }
 0x2f2   :  { %v554_v59 = vsel %vm553_vm9, %v546_v42, %v548_v57  ;;  %v534_v1 = vadd.f32 %v530_v60, %v518_v61  ;;  %v565_v14 = vmax.f32 %v563_v12, %v530_v60  ;;  %788 = vmatpush.msrb.mxu1 %v712_v46  ;;  %1526 = vmatpush.msk.msra.mxu0 %vm150_vm0, %v734_v47  ;;  %v719_v57 = vld [vmem:[#allocation7 + $0x40] sm:$0xff]  ;;  %v716_v60 = vld [vmem:[#allocation7 + $0x28] sm:$0xff]  ;;  %v1810_v12 = vld [vmem:[%s2764_s8 + $0xf4] sm:$0xf0] }
 0x2f3   :  { %v558_v62 = vadd.f32 %v554_v59, %v541_v56  ;;  %v568_v13 = vmax.f32 %v566_v11, %v554_v59  ;;  %v722_v56 = vld [vmem:[#allocation7 + $0x58] sm:$0xff]  ;;  %v1651_v11 = vld [vmem:[%s2764_s8 + $0xf0] sm:$0xf]  ;;  %v1584_v46 = vor.u32 %v1791_v34, %v1581_v36  ;;  %v1636_v47 = vor.u32 %v1806_v38, %v1635_v37  ;;  %v1541_v36 = vld [vmem:[%s2764_s8 + $0x18] sm:$0xf0] }
 0x2f4   :  { %v542_v5 = vadd.f32 %v538_v2, %v534_v1  ;;  %v567_v15 = vmax.f32 %v565_v14, %v538_v2  ;;  %805 = vmatpush.msra.mxu0 %v731_v48  ;;  %v1652_v14 = vor.u32 %v1810_v12, %v1651_v11  ;;  %v1789_v48 = vld [vmem:[%s2764_s8 + $0x54] sm:$0xf]  ;;  %v1547_v12 = vld [vmem:[%s2764_s8 + $0x20] sm:$0xf]  ;;  %v1603_v34 = vld [vmem:[%s2764_s8 + $0x90] sm:$0xf] }
 0x2f5   :  { %v560_v0 = vmul.f32 0.2, %v558_v62 }
 0x2f6   :  { %806 = vmatpush.msra.mxu0 %v728_v53  ;;  %1098 = vmatpush.bf16.msrb.mxu2 %v1652_v14  ;;  %v1627_v53 = vld [vmem:[%s2764_s8 + $0xc0] sm:$0xf] }
 0x2f7   :  { %1510 = vmatmul.msk.f32.vlgmr.msra.gmra.mxu3 %vm223_vm1, %v560_v0 }
 0x2f8   :  { %v550_v3 = vpop.permute.xlu1 %549  ;;  %807 = vmatpush.msra.mxu0 %v725_v55 }
 0x2f9   :  { %v552_v4 = vpop.permute.xlu0 %551 }
 0x2fa   :  { %v555_v6 = vsel %vm553_vm9, %v550_v3, %v552_v4  ;;  %808 = vmatpush.msra.mxu0 %v722_v56 }
 0x2fb   :  { %v559_v8 = vadd.f32 %v555_v6, %v542_v5  ;;  %v569_v16 = vmax.f32 %v567_v15, %v555_v6  ;;  %v1793_v15 = vld [vmem:[%s2764_s8 + $0x74] sm:$0xf] }
 0x2fc   :  { %809 = vmatpush.msra.mxu0 %v719_v57 }
 0x2fd   :  { %v561_v9 = vmul.f32 0.2, %v559_v8  ;;  %v1794_v8 = vld [vmem:[%s2764_s8 + $0x74] sm:$0xf0] }
 0x2fe   :  { %810 = vmatpush.msra.mxu0 %v716_v60  ;;  %v1588_v10 = vor.u32 %v1794_v8, %v1587_v7  ;;  %v1557_v7 = vld [vmem:[%s2764_s8 + $0x38] sm:$0xf0] }
 0x2ff   :  { %1511 = vmatmul.msk.f32.gmra.mxu3 %vm223_vm1, %v561_v9 }
 0x300   :  { %811 = vmatpush.msra.mxu0 %v713_v63  ;;  %1084 = vmatpush.bf16.msrb.mxu3 %v1588_v10  ;;  %v872_v10 = vld [vmem:[%s2764_s8 + $0x130] sm:$0x77] }
 0x301   :  { %v994_v11 = vunpack.c.l.b16 %v872_v10 }
 0x303   :  { %v1034_v14 = vpack.c.b16 %v994_v11, %v994_v11  ;;  %v1629_v11 = vld [vmem:[%s2764_s8 + $0xc8] sm:$0xf0] }
 0x307   :  { %1512 = vmatmul.msk.f32.gmra.mxu3 %vm223_vm1, %v568_v13 }
 0x30f   :  { %1513 = vmatmul.msk.f32.gmra.mxu3 %vm223_vm1, %v569_v16  ;;  %v1589_v16 = vld [vmem:[%s2764_s8 + $0x78] sm:$0xf0] }
 0x310   :  { %v1592_v31 = vor.u32 %v1793_v15, %v1589_v16  ;;  %v1611_v16 = vld [vmem:[%s2764_s8 + $0xa0] sm:$0xf] }
 0x37a   :  { %v614_v17 = vpop.f32.mrf.mxu3 }
 0x37b   :  { %v626_v18 = vmax.f32 %v614_v17, 0.0  ;;  %v1579_v17 = vld [vmem:[%s2764_s8 + $0x60] sm:$0xf] }
 0x37d   :  { %1514 = vmatmul.msk.f32.vlgmr.msra.gmra.mxu2 %vm334_vm14, %v626_v18  ;;  %v1792_v18 = vld [vmem:[%s2764_s8 + $0x64] sm:$0xf0] }
 0x382   :  { %v617_v20 = vpop.f32.mrf.mxu3 }
 0x383   :  { %v627_v21 = vmax.f32 %v617_v20, 0.0  ;;  %v1643_v20 = vld [vmem:[%s2764_s8 + $0xe0] sm:$0xf] }
 0x385   :  { %1515 = vmatmul.msk.f32.gmra.mxu2 %vm334_vm14, %v627_v21  ;;  %v1808_v21 = vld [vmem:[%s2764_s8 + $0xe4] sm:$0xf0] }
 0x38a   :  { %v620_v22 = vpop.f32.mrf.mxu3 }
 0x38b   :  { %v628_v24 = vmax.f32 %v620_v22, 0.0 }
 0x38d   :  { %1516 = vmatmul.msk.f32.gmra.mxu2 %vm334_vm14, %v628_v24  ;;  %v1580_v24 = vor.u32 %v1792_v18, %v1579_v17  ;;  %v1800_v17 = vld [vmem:[%s2764_s8 + $0xa4] sm:$0xf0]  ;;  %v1783_v18 = vld [vmem:[%s2764_s8 + $0x24] sm:$0xf] }
 0x38f   :  { %1085 = vmatpush.bf16.msrb.mxu3 %v1580_v24 }
 0x392   :  { %v623_v28 = vpop.f32.mrf.mxu3 }
 0x393   :  { %v629_v29 = vmax.f32 %v623_v28, 0.0  ;;  %v1571_v28 = vld [vmem:[%s2764_s8 + $0x50] sm:$0xf] }
 0x394   :  { %v1572_v40 = vor.u32 %v1790_v27, %v1571_v28  ;;  %v1675_v28 = vld [vmem:[%s2764_s8 + $0x120] sm:$0xf] }
 0x395   :  { %1517 = vmatmul.msk.f32.gmra.mxu2 %vm334_vm14, %v629_v29 }
 0x396   :  { %1086 = vmatpush.bf16.msrb.mxu3 %v1572_v40  ;;  %v1814_v40 = vld [vmem:[%s2764_s8 + $0x114] sm:$0xf0] }
 0x400   :  { %v659_v52 = vpop.f32.mrf.mxu2 }
 0x408   :  { %v662_v42 = vpop.f32.mrf.mxu2 }
 0x410   :  { %v665_v50 = vpop.f32.mrf.mxu2 }
 0x411   :  { %v671_v51 = vadd.f32 %v665_v50, %v659_v52  ;;  %v1644_v52 = vor.u32 %v1808_v21, %v1643_v20  ;;  %v1612_v20 = vor.u32 %v1800_v17, %v1611_v16  ;;  %v1549_v21 = vld [vmem:[%s2764_s8 + $0x28] sm:$0xf0] }
 0x412   :  { %v1552_v24 = vor.u32 %v1783_v18, %v1549_v21  ;;  %v1801_v18 = vld [vmem:[%s2764_s8 + $0xb4] sm:$0xf] }
 0x413   :  { %v1518_v54 = vmul.f32 -1.442695, %v671_v51  ;;  %1099 = vmatpush.bf16.msrb.mxu2 %v1644_v52  ;;  %v1573_v51 = vld [vmem:[%s2764_s8 + $0x58] sm:$0xf0]  ;;  %v1782_v52 = vld [vmem:[%s2764_s8 + $0x14] sm:$0xf0] }
 0x415   :  { %1863 = vpow2.f32 %v1518_v54  ;;  %v1804_v54 = vld [vmem:[%s2764_s8 + $0xc4] sm:$0xf0] }
 0x417   :  { %1100 = vmatpush.bf16.msrb.mxu2 %v1636_v47  ;;  %v1779_v47 = vld [vmem:[%s2764_s8 + $0x4] sm:$0xf] }
 0x418   :  { %v668_v58 = vpop.f32.mrf.mxu2 }
 0x419   :  { %v672_v59 = vadd.f32 %v668_v58, %v662_v42  ;;  %v1563_v42 = vld [vmem:[%s2764_s8 + $0x40] sm:$0xf]  ;;  %v1576_v58 = vor.u32 %v1789_v48, %v1573_v51  ;;  %v1533_v48 = vld [vmem:[%s2764_s8 + $0x8] sm:$0xf0] }
 0x41a   :  { %v1564_v55 = vor.u32 %v1788_v43, %v1563_v42  ;;  %v1531_v42 = vld [vmem:[%s2764_s8] sm:$0xf]  ;;  %v1780_v43 = vld [vmem:[%s2764_s8 + $0x4] sm:$0xf0]  ;;  %v1536_v51 = vor.u32 %v1779_v47, %v1533_v48 }
 0x41b   :  { %v1864_v61 = vpop.eup %1863  ;;  %v1519_v62 = vmul.f32 -1.442695, %v672_v59  ;;  %v1628_v59 = vor.u32 %v1804_v54, %v1627_v53  ;;  %v1659_v53 = vld [vmem:[%s2764_s8 + $0x100] sm:$0xf]  ;;  %v1812_v54 = vld [vmem:[%s2764_s8 + $0x104] sm:$0xf0] }
 0x41c   :  { %v679_v0 = vadd.f32 1.0, %v1864_v61  ;;  %v1787_v61 = vld [vmem:[%s2764_s8 + $0x44] sm:$0xf]  ;;  %1087 = vmatpush.bf16.msrb.mxu3 %v1564_v55  ;;  %v995_v55 = vunpack.c.h.b16 %v872_v10 }
 0x41d   :  { %1865 = vpow2.f32 %v1519_v62  ;;  %v1565_v62 = vld [vmem:[%s2764_s8 + $0x48] sm:$0xf0]  ;;  %1101 = vmatpush.bf16.msrb.mxu2 %v1628_v59  ;;  %v1803_v10 = vld [vmem:[%s2764_s8 + $0xc4] sm:$0xf] }
 0x41e   :  { %1867 = vrcp.f32 %v679_v0  ;;  %v690_v5 = vand.u32 2147483647, %v679_v0  ;;  %v692_v9 = vand.u32 2147483648, %v679_v0  ;;  %vm686_vm11 = vweird.f32 %v679_v0  ;;  %v1874_v48 = vld [vmem:[#allocation2 + $0x20] sm:$0xff] }
 0x41f   :  { %v1035_v59 = vpack.c.b16 %v995_v55, %v995_v55 }
 0x420   :  { %vm691_vm13 = vcmp.eq.f32.partialorder %v690_v5, 8.507059e+37  ;;  %v693_v30 = vor.u32 1.1754944e-38, %v692_v9  ;;  %v1802_v5 = vld [vmem:[%s2764_s8 + $0xb4] sm:$0xf0] }
 0x423   :  { %v1866_v1 = vpop.eup %1865 }
 0x424   :  { %v1868_v2 = vpop.eup %1867  ;;  %v2410_v3 = vadd.f32 1.0, %v1866_v1  ;;  %v1555_v1 = vld [vmem:[%s2764_s8 + $0x30] sm:$0xf] }
 0x425   :  { %v682_v4 = vmul.f32 %v1868_v2, %v679_v0  ;;  %vm687_vm0 = vweird.f32 %v1868_v2  ;;  %v1568_v0 = vor.u32 %v1787_v61, %v1565_v62  ;;  %v1807_v62 = vld [vmem:[%s2764_s8 + $0xe4] sm:$0xf] }
 0x426   :  { %1869 = vrcp.f32 %v2410_v3  ;;  %vm688_vm12 = vmor %vm686_vm11, %vm687_vm0  ;;  %v705_v44 = vand.u32 2147483647, %v2410_v3  ;;  %v707_v45 = vand.u32 2147483648, %v2410_v3  ;;  %vm701_vm15 = vweird.f32 %v2410_v3 }
 0x427   :  { %v683_v6 = vsub.f32 1.0, %v682_v4  ;;  %vm1437_vm0 = vcmask 523264  }
 0x428   :  { %v708_v57 = vor.u32 1.1754944e-38, %v707_v45  ;;  %vm706_vm3 = vcmp.eq.f32.partialorder %v705_v44, 8.507059e+37  ;;  %v1595_v44 = vld [vmem:[%s2764_s8 + $0x80] sm:$0xf]  ;;  %v1532_v45 = vor.u32 %v1780_v43, %v1531_v42 }
 0x429   :  { %v684_v13 = vmul.f32 %v1868_v2, %v683_v6  ;;  %v1785_v6 = vld [vmem:[%s2764_s8 + $0x34] sm:$0xf] }
 0x42a   :  { %v1560_v9 = vor.u32 %v1785_v6, %v1557_v7  ;;  %v1813_v6 = vld [vmem:[%s2764_s8 + $0x114] sm:$0xf] }
 0x42b   :  { %v685_v22 = vadd.f32 %v1868_v2, %v684_v13  ;;  %v1784_v13 = vld [vmem:[%s2764_s8 + $0x24] sm:$0xf0] }
 0x42c   :  { %v1870_v29 = vpop.eup %1869  ;;  %v1548_v15 = vor.u32 %v1784_v13, %v1547_v12  ;;  %v1811_v12 = vld [vmem:[%s2764_s8 + $0x104] sm:$0xf]  ;;  %v1632_v13 = vor.u32 %v1803_v10, %v1629_v11  ;;  %v1827_v11 = vld [vmem:[%s2766_s10 + $0x50] sm:$0xff] }
 0x42d   :  { %v689_v32 = vsel %vm688_vm12, %v1868_v2, %v685_v22  ;;  %v697_v49 = vmul.f32 %v1870_v29, %v2410_v3  ;;  %vm702_vm14 = vweird.f32 %v1870_v29  ;;  %v1786_v2 = vld [vmem:[%s2764_s8 + $0x34] sm:$0xf0]  ;;  %v1619_v3 = vld [vmem:[%s2764_s8 + $0xb0] sm:$0xf] }
 0x42e   :  { %v694_v39 = vsel %vm691_vm13, %v693_v30, %v689_v32  ;;  %vm703_vm2 = vmor %vm701_vm15, %vm702_vm14  ;;  %v1556_v4 = vor.u32 %v1786_v2, %v1555_v1  ;;  %v1620_v8 = vor.u32 %v1802_v5, %v1619_v3  ;;  %v1798_v32 = vld [vmem:[%s2764_s8 + $0x94] sm:$0xf0]  ;;  %v1677_v2 = vld [vmem:[%s2764_s8 + $0x128] sm:$0xf0] }
 0x42f   :  { %1521 = vmatmul.msk.f32.vlgmr.msrb.gmra.mxu0 %vm223_vm1, %v694_v39  ;;  %1442 = vst.msk [vmem:[#allocation9] sm:$0xff] %vm223_vm1, %v694_v39  ;;  %1524 = vmatmul.msk.f32.vlgmr.msrb.gmra.mxu1 %vm223_vm1, %v694_v39  ;;  %v698_v41 = vsub.f32 1.0, %v697_v49  ;;  %v1781_v49 = vld [vmem:[%s2764_s8 + $0x14] sm:$0xf]  ;;  %v1604_v37 = vor.u32 %v1798_v32, %v1603_v34  ;;  %v1637_v5 = vld [vmem:[%s2764_s8 + $0xd8] sm:$0xf0] }
 0x430   :  { %1126 = vmatpush.bf16.msrb.mxu0 %v1592_v31  ;;  %1088 = vmatpush.bf16.msrb.mxu3 %v1556_v4  ;;  %v1539_v31 = vld [vmem:[%s2764_s8 + $0x10] sm:$0xf]  ;;  %v1544_v38 = vor.u32 %v1781_v49, %v1541_v36  ;;  %v1805_v4 = vld [vmem:[%s2764_s8 + $0xd4] sm:$0xf] }
 0x431   :  { %v699_v50 = vmul.f32 %v1870_v29, %v698_v41  ;;  %1102 = vmatpush.bf16.msrb.mxu2 %v1620_v8  ;;  %v1540_v27 = vor.u32 %v1782_v52, %v1539_v31  ;;  %v1640_v7 = vor.u32 %v1805_v4, %v1637_v5  ;;  %v1669_v8 = vld [vmem:[%s2764_s8 + $0x118] sm:$0xf0]  ;;  %v1797_v31 = vld [vmem:[%s2764_s8 + $0x94] sm:$0xf]  ;;  %v1818_v5 = vld [vmem:[%s2766_s10 + $0x8] sm:$0xff] }
 0x432   :  { %v1605_v52 = vld [vmem:[%s2764_s8 + $0x98] sm:$0xf0]  ;;  %v1831_v4 = vld [vmem:[%s2766_s10 + $0x70] sm:$0xff] }
 0x433   :  { %v700_v56 = vadd.f32 %v1870_v29, %v699_v50  ;;  %v1608_v32 = vor.u32 %v1797_v31, %v1605_v52 }
 0x434   :  { %1127 = vmatpush.bf16.msrb.mxu0 %v1584_v46  ;;  %1089 = vmatpush.bf16.msrb.mxu3 %v1548_v15  ;;  %v1796_v46 = vld [vmem:[%s2764_s8 + $0x84] sm:$0xf0] }
 0x435   :  { %v704_v60 = vsel %vm703_vm2, %v1870_v29, %v700_v56  ;;  %v1816_v29 = vld [vmem:[%s2764_s8 + $0x124] sm:$0xf0]  ;;  %1103 = vmatpush.bf16.msrb.mxu2 %v1612_v20  ;;  %v1596_v50 = vor.u32 %v1796_v46, %v1595_v44  ;;  %v1660_v56 = vor.u32 %v1812_v54, %v1659_v53  ;;  %v1621_v20 = vld [vmem:[%s2764_s8 + $0xb8] sm:$0xf0]  ;;  %v1871_v44 = vld [vmem:[#allocation2] sm:$0xff] }
 0x436   :  { %v709_v63 = vsel %vm706_vm3, %v708_v57, %v704_v60  ;;  %v1676_v30 = vor.u32 %v1816_v29, %v1675_v28  ;;  %v1809_v57 = vld [vmem:[%s2764_s8 + $0xf4] sm:$0xf]  ;;  %v1624_v21 = vor.u32 %v1801_v18, %v1621_v20  ;;  %v1873_v46 = vld [vmem:[#allocation2 + $0x18] sm:$0xff] }
 0x437   :  { %1522 = vmatmul.msk.f32.gmra.mxu0 %vm223_vm1, %v709_v63  ;;  %1443 = vst.msk [vmem:[#allocation9 + $0x8] sm:$0xff] %vm223_vm1, %v709_v63  ;;  %1525 = vmatmul.msk.f32.gmra.mxu1 %vm223_vm1, %v709_v63 }
 0x438   :  { %1128 = vmatpush.bf16.msrb.mxu0 %v1576_v58  ;;  %1090 = vmatpush.bf16.msrb.mxu3 %v1540_v27  ;;  %v1653_v58 = vld [vmem:[%s2764_s8 + $0xf8] sm:$0xf0] }
 0x439   :  { %1104 = vmatpush.bf16.msrb.mxu2 %v1604_v37  ;;  %v1656_v60 = vor.u32 %v1809_v57, %v1653_v58  ;;  %v1875_v58 = vld [vmem:[#allocation2 + $0x10] sm:$0xff] }
 0x43c   :  { %1129 = vmatpush.bf16.msrb.mxu0 %v1568_v0  ;;  %1091 = vmatpush.bf16.msrb.mxu3 %v1532_v45  ;;  %v1815_v0 = vld [vmem:[%s2764_s8 + $0x124] sm:$0xf]  ;;  %v1872_v45 = vld [vmem:[#allocation2 + $0x8] sm:$0xff] }
 0x43d   :  { %1105 = vmatpush.bf16.msrb.mxu2 %v1596_v50  ;;  %v1680_v3 = vor.u32 %v1815_v0, %v1677_v2  ;;  %v1821_v0 = vld [vmem:[%s2766_s10 + $0x20] sm:$0xff]  ;;  %v1832_v2 = vld [vmem:[%s2766_s10 + $0x78] sm:$0xff] }
 0x43f   :  { %1527 = vmatmul.msk.f32.vlgmr.msra.gmra.mxu0 %vm223_vm1, %v694_v39  ;;  %v1667_v39 = vld [vmem:[%s2764_s8 + $0x110] sm:$0xf] }
 0x440   :  { %1130 = vmatpush.bf16.msrb.mxu0 %v1560_v9  ;;  %v1668_v41 = vor.u32 %v1814_v40, %v1667_v39  ;;  %v1672_v9 = vor.u32 %v1813_v6, %v1669_v8  ;;  %v1795_v39 = vld [vmem:[%s2764_s8 + $0x84] sm:$0xf]  ;;  %v1597_v40 = vld [vmem:[%s2764_s8 + $0x88] sm:$0xf0] }
 0x441   :  { %v1600_v43 = vor.u32 %v1795_v39, %v1597_v40  ;;  %v1830_v6 = vld [vmem:[%s2766_s10 + $0x68] sm:$0xff]  ;;  %v1829_v8 = vld [vmem:[%s2766_s10 + $0x60] sm:$0xff] }
 0x444   :  { %1131 = vmatpush.bf16.msrb.mxu0 %v1552_v24  ;;  %v1613_v24 = vld [vmem:[%s2764_s8 + $0xa8] sm:$0xf0] }
 0x447   :  { %1528 = vmatmul.msk.f32.gmra.mxu0 %vm223_vm1, %v709_v63  ;;  %vm1077_vm1 = vcmask 1042432   ;;  %v1645_v63 = vld [vmem:[%s2764_s8 + $0xe8] sm:$0xf0] }
 0x448   :  { %v1079_v22 = vsel %vm1077_vm1, %v1034_v14, 0  ;;  %1132 = vmatpush.bf16.msrb.mxu0 %v1544_v38  ;;  %v1082_v61 = vsel %vm1077_vm1, %v1035_v59, 0  ;;  %v1648_v1 = vor.u32 %v1807_v62, %v1645_v63  ;;  %v1661_v14 = vld [vmem:[%s2764_s8 + $0x108] sm:$0xf0]  ;;  %v1824_v63 = vld [vmem:[%s2766_s10 + $0x38] sm:$0xff] }
 0x449   :  { %1116 = vmatpush.bf16.msra.mxu1 %v1079_v22  ;;  %1158 = vmatpush.bf16.msra.mxu3 %v1082_v61  ;;  %v1664_v15 = vor.u32 %v1811_v12, %v1661_v14  ;;  %v1799_v22 = vld [vmem:[%s2764_s8 + $0xa4] sm:$0xf]  ;;  %v873_v12 = vld [vmem:[%s2765_s9] sm:$0x3]  ;;  %s1448_s9 = sshll.u32 %s2016_s4, 4  ;;  %s1449_s9 = int_to_ptr.vmem [resolvable:$true] %s1448_s9 }
 0x44a   :  { %v1616_v28 = vor.u32 %v1799_v22, %v1613_v24  ;;  %1314 = vmatpush.bf16.msra.mxu2 %v1824_v63  ;;  %v875_v14 = vperm.slane %v873_v12, 0 }
 0x44c   :  { %1133 = vmatpush.bf16.msrb.mxu0 %v1536_v51 }
 0x44d   :  { %1117 = vmatpush.bf16.msra.mxu1 %v1676_v30  ;;  %1159 = vmatpush.bf16.msra.mxu3 %v1680_v3  ;;  %v1819_v3 = vld [vmem:[%s2766_s10 + $0x10] sm:$0xff] }
 0x451   :  { %1118 = vmatpush.bf16.msra.mxu1 %v1668_v41  ;;  %1160 = vmatpush.bf16.msra.mxu3 %v1672_v9  ;;  %v1828_v9 = vld [vmem:[%s2766_s10 + $0x58] sm:$0xff] }
 0x455   :  { %1119 = vmatpush.bf16.msra.mxu1 %v1660_v56  ;;  %1161 = vmatpush.bf16.msra.mxu3 %v1664_v15 }
 0x459   :  { %1140 = vmatpush.bf16.msrb.mxu1 %v1656_v60  ;;  %v1876_v60 = vld [vmem:[#allocation2 + $0x28] sm:$0xff] }
 0x45d   :  { %1141 = vmatpush.bf16.msrb.mxu1 %v1648_v1  ;;  %v1820_v1 = vld [vmem:[%s2766_s10 + $0x18] sm:$0xff] }
 0x461   :  { %1142 = vmatpush.bf16.msrb.mxu1 %v1640_v7  ;;  %v1817_v7 = vld [vmem:[%s2766_s10] sm:$0xff] }
 0x465   :  { %1143 = vmatpush.bf16.msrb.mxu1 %v1632_v13  ;;  %v1826_v13 = vld [vmem:[%s2766_s10 + $0x48] sm:$0xff] }
 0x469   :  { %1144 = vmatpush.bf16.msrb.mxu1 %v1624_v21 }
 0x46d   :  { %1145 = vmatpush.bf16.msrb.mxu1 %v1616_v28 }
 0x471   :  { %1146 = vmatpush.bf16.msrb.mxu1 %v1608_v32  ;;  %v876_v32 = vperm.slane %v873_v12, 1 }
 0x475   :  { %1147 = vmatpush.bf16.msrb.mxu1 %v1600_v43 }
 0x4ac   :  { %v767_v16 = vpop.f32.mrf.mxu0  ;;  %v790_v17 = vpop.f32.mrf.mxu1 }
 0x4ad   :  { %v768_v29 = vadd.f32 1.0, %v767_v16  ;;  %v791_v30 = vadd.f32 1.0, %v790_v17  ;;  %v1825_v16 = vld [vmem:[%s2766_s10 + $0x40] sm:$0xff] }
 0x4af   :  { %v819_v49 = vmul.f32 %v768_v29, %v2328_v25  ;;  %v820_v36 = vmul.f32 %v791_v30, %v2321_v19 }
 0x4b1   :  { %v825_v25 = vadd.f32 %v1871_v44, %v819_v49  ;;  %v826_v19 = vadd.f32 %v1872_v45, %v820_v36 }
 0x4b4   :  { %v770_v34 = vpop.f32.mrf.mxu0  ;;  %v793_v27 = vpop.f32.mrf.mxu1 }
 0x4b5   :  { %v771_v37 = vadd.f32 1.0, %v770_v34  ;;  %v794_v38 = vadd.f32 1.0, %v793_v27 }
 0x4b7   :  { %v822_v41 = vmul.f32 %v771_v37, %v2337_v33  ;;  %v823_v42 = vmul.f32 %v794_v38, %v2331_v26 }
 0x4b9   :  { %v828_v47 = vadd.f32 %v1873_v46, %v822_v41  ;;  %v829_v50 = vadd.f32 %v1874_v48, %v823_v42 }
 0x4bb   :  { %v831_v51 = vpack.c.bf16 %v828_v47, %v825_v25  ;;  %v832_v53 = vpack.c.bf16 %v829_v50, %v826_v19 }
 0x4bc   :  { %v813_v54 = vpop.f32.mrf.mxu0 }
 0x4bd   :  { %1092 = vmatmul.bf16.vlgmr.msrb.gmra.mxu3 %v831_v51  ;;  %1106 = vmatmul.bf16.vlgmr.msrb.gmra.mxu2 %v832_v53  ;;  %v814_v33 = vadd.f32 1.0, %v813_v54  ;;  %v1840_v54 = vld [vmem:[%s2768_s12 + $0x38] sm:$0xff] }
 0x4be   :  { %1134 = vmatmul.bf16.vlgmr.msrb.gmra.mxu0 %v831_v51  ;;  %1328 = vmatpush.bf16.msrb.mxu3 %v1832_v2 }
 0x4bf   :  { %v821_v26 = vmul.f32 %v814_v33, %v2340_v23  ;;  %v1823_v23 = vld [vmem:[%s2766_s10 + $0x30] sm:$0xff]  ;;  %1417 = vmatpush.bf16.msra.mxu0 %v1840_v54 }
 0x4c0   :  { %1315 = vmatpush.bf16.msra.mxu2 %v1823_v23  ;;  %v1839_v33 = vld [vmem:[%s2768_s12 + $0x30] sm:$0xff] }
 0x4c1   :  { %v827_v59 = vadd.f32 %v1875_v58, %v821_v26  ;;  %v1837_v26 = vld [vmem:[%s2768_s12 + $0x20] sm:$0xff]  ;;  %v1834_v58 = vld [vmem:[%s2768_s12 + $0x8] sm:$0xff] }
 0x4c2   :  { %1329 = vmatpush.bf16.msrb.mxu3 %v1831_v4 }
 0x4c3   :  { %1418 = vmatpush.bf16.msra.mxu0 %v1839_v33 }
 0x4c4   :  { %v816_v55 = vpop.f32.mrf.mxu0 }
 0x4c5   :  { %v817_v56 = vadd.f32 1.0, %v816_v55  ;;  %v1838_v55 = vld [vmem:[%s2768_s12 + $0x28] sm:$0xff] }
 0x4c6   :  { %1330 = vmatpush.bf16.msrb.mxu3 %v1830_v6 }
 0x4c7   :  { %v824_v57 = vmul.f32 %v817_v56, %v2347_v35  ;;  %v1822_v35 = vld [vmem:[%s2766_s10 + $0x28] sm:$0xff]  ;;  %1419 = vmatpush.bf16.msra.mxu0 %v1838_v55  ;;  %v1836_v56 = vld [vmem:[%s2768_s12 + $0x18] sm:$0xff] }
 0x4c8   :  { %1316 = vmatpush.bf16.msra.mxu2 %v1822_v35 }
 0x4c9   :  { %v830_v61 = vadd.f32 %v1876_v60, %v824_v57  ;;  %v1835_v57 = vld [vmem:[%s2768_s12 + $0x10] sm:$0xff] }
 0x4ca   :  { %1331 = vmatpush.bf16.msrb.mxu3 %v1829_v8  ;;  %v1854_v8 = vld [vmem:[%s2769_s13] ss:$0 sm:$0xff] }
 0x4cb   :  { %v833_v62 = vpack.c.bf16 %v830_v61, %v827_v59  ;;  %1420 = vmatpush.bf16.msra.mxu0 %v1837_v26  ;;  %v1833_v59 = vld [vmem:[%s2768_s12] sm:$0xff]  ;;  %s2014_s12 = smov [#allocation9]  }
 0x4cc   :  { %1317 = vmatpush.bf16.msra.mxu2 %v1821_v0  ;;  %v1853_v61 = vld [vmem:[%s2767_s11] ss:$0 sm:$0xff]  ;;  %s1463_s18 = sshll.u32 %s2014_s12, 4  ;;  %s1464_s18 = int_to_ptr.vmem [resolvable:$true] %s1463_s18 }
 0x4cd   :  { %1681 = vmatmul.msk.bf16.vlgmr.msra.gmra.mxu1 %vm143_vm5, %v833_v62  ;;  %1682 = vmatmul.msk.bf16.vlgmr.msra.gmra.mxu3 %vm143_vm5, %v833_v62  ;;  %1471 = dma.vmem_to_hbm [thread:$0]  %s1464_s18, 256, %s1466_s20, [#allocation10], %s2015_s2, %s2015_s2, %s2010_s27  }
 0x4ce   :  { %1332 = vmatpush.bf16.msrb.mxu3 %v1828_v9 }
 0x4cf   :  { %1421 = vmatpush.bf16.msra.mxu0 %v1836_v56 }
 0x4d0   :  { %1318 = vmatpush.bf16.msra.mxu2 %v1820_v1 }
 0x4d2   :  { %1333 = vmatpush.bf16.msrb.mxu3 %v1827_v11 }
 0x4d3   :  { %1422 = vmatpush.bf16.msra.mxu0 %v1835_v57 }
 0x4d4   :  { %1319 = vmatpush.bf16.msra.mxu2 %v1819_v3 }
 0x4d6   :  { %1334 = vmatpush.bf16.msrb.mxu3 %v1826_v13 }
 0x4d7   :  { %1423 = vmatpush.bf16.msra.mxu0 %v1834_v58 }
 0x4d8   :  { %1320 = vmatpush.bf16.msra.mxu2 %v1818_v5 }
 0x4da   :  { %1335 = vmatpush.bf16.msrb.mxu3 %v1825_v16 }
 0x4db   :  { %1424 = vmatpush.bf16.msra.mxu0 %v1833_v59 }
 0x4dc   :  { %1321 = vmatpush.bf16.msra.mxu2 %v1817_v7 }
 0x4dd   :  { %1148 = vmatmul.bf16.vlgmr.msrb.gmra.mxu1 %v832_v53 }
 0x53b   :  { %v1135_v34 = vpop.f32.mrf.mxu0 }
 0x53c   :  { %v1136_v40 = vadd.f32 %v1135_v34, %v876_v32 }
 0x540   :  { %v1093_v10 = vpop.f32.mrf.mxu3  ;;  %v1107_v15 = vpop.f32.mrf.mxu2 }
 0x541   :  { %v1094_v17 = vadd.f32 %v1093_v10, %v875_v14 }
 0x543   :  { %v1108_v21 = vadd.f32 %v1107_v15, %v1094_v17  ;;  %v1137_v42 = vpop.f32.mrf.mxu0 }
 0x544   :  { %v1138_v43 = vadd.f32 %v1137_v42, %v876_v32 }
 0x548   :  { %v1095_v18 = vpop.f32.mrf.mxu3  ;;  %v1109_v28 = vpop.f32.mrf.mxu2 }
 0x549   :  { %v1096_v22 = vadd.f32 %v1095_v18, %v875_v14 }
 0x54a   :  { %v1121_v20 = vpop.f32.mrf.mxu1 }
 0x54b   :  { %v1122_v24 = vadd.f32 %v1121_v20, %v1108_v21  ;;  %v1110_v29 = vadd.f32 %v1109_v28, %v1096_v22 }
 0x54d   :  { %v1172_v31 = vmul.f32 0.01, %v1122_v24  ;;  %vm1168_vm5 = vcmp.gt.f32.partialorder %v1122_v24, 0.0 }
 0x54f   :  { %v1176_v49 = vsel %vm1168_vm5, %v1122_v24, %v1172_v31 }
 0x550   :  { %v1163_v38 = vpop.f32.mrf.mxu3 }
 0x552   :  { %v1123_v30 = vpop.f32.mrf.mxu1 }
 0x553   :  { %v1124_v52 = vadd.f32 %v1123_v30, %v1110_v29 }
 0x555   :  { %vm1170_vm4 = vcmp.gt.f32.partialorder %v1124_v52, 0.0  ;;  %v1174_v27 = vmul.f32 0.01, %v1124_v52 }
 0x557   :  { %v1178_v36 = vsel %vm1170_vm4, %v1124_v52, %v1174_v27 }
 0x558   :  { %v1180_v37 = vpack.c.bf16 %v1178_v36, %v1176_v49  ;;  %v1165_v19 = vpop.f32.mrf.mxu3 }
 0x55a   :  { %v1149_v39 = vpop.f32.mrf.mxu1  ;;  %1322 = vmatmul.bf16.vlgmr.msra.gmra.mxu2 %v1180_v37 }
 0x55b   :  { %v1150_v41 = vadd.f32 %v1149_v39, %v1136_v40 }
 0x55d   :  { %v1164_v44 = vadd.f32 %v1163_v38, %v1150_v41 }
 0x55f   :  { %v1173_v46 = vmul.f32 0.01, %v1164_v44  ;;  %vm1169_vm6 = vcmp.gt.f32.partialorder %v1164_v44, 0.0 }
 0x561   :  { %v1177_v50 = vsel %vm1169_vm6, %v1164_v44, %v1173_v46 }
 0x562   :  { %v1151_v25 = vpop.f32.mrf.mxu1 }
 0x563   :  { %v1152_v45 = vadd.f32 %v1151_v25, %v1138_v43 }
 0x565   :  { %v1166_v47 = vadd.f32 %v1165_v19, %v1152_v45 }
 0x567   :  { %vm1171_vm7 = vcmp.gt.f32.partialorder %v1166_v47, 0.0  ;;  %v1175_v48 = vmul.f32 0.01, %v1166_v47 }
 0x569   :  { %v1179_v51 = vsel %vm1171_vm7, %v1166_v47, %v1175_v48 }
 0x56a   :  { %v1181_v53 = vpack.c.bf16 %v1179_v51, %v1177_v50 }
 0x56c   :  { %1336 = vmatmul.bf16.vlgmr.msrb.gmra.mxu3 %v1181_v53 }
 0x5dd   :  { %v1323_v60 = vpop.f32.mrf.mxu2 }
 0x5de   :  { %v1324_v63 = vadd.f32 %v1853_v61, %v1323_v60 }
 0x5e5   :  { %v1325_v23 = vpop.f32.mrf.mxu2 }
 0x5e6   :  { %v1326_v0 = vadd.f32 %v1853_v61, %v1325_v23 }
 0x5ef   :  { %v1337_v62 = vpop.f32.mrf.mxu3 }
 0x5f0   :  { %v1338_v35 = vadd.f32 %v1337_v62, %v1324_v63 }
 0x5f2   :  { %v1344_v2 = vmul.f32 0.01, %v1338_v35  ;;  %vm1342_vm8 = vcmp.gt.f32.partialorder %v1338_v35, 0.0 }
 0x5f4   :  { %v1346_v5 = vsel %vm1342_vm8, %v1338_v35, %v1344_v2 }
 0x5f7   :  { %v1339_v1 = vpop.f32.mrf.mxu3 }
 0x5f8   :  { %v1340_v3 = vadd.f32 %v1339_v1, %v1326_v0 }
 0x5fa   :  { %vm1343_vm10 = vcmp.gt.f32.partialorder %v1340_v3, 0.0  ;;  %v1345_v4 = vmul.f32 0.01, %v1340_v3 }
 0x5fc   :  { %v1347_v6 = vsel %vm1343_vm10, %v1340_v3, %v1345_v4 }
 0x5fd   :  { %v1348_v7 = vpack.c.bf16 %v1347_v6, %v1346_v5 }
 0x5ff   :  { %1425 = vmatmul.bf16.vlgmr.msra.gmra.mxu0 %v1348_v7 }
 0x67c   :  { %v1426_v9 = vpop.f32.mrf.mxu0 }
 0x67d   :  { %v1427_v10 = vadd.f32 %v1854_v8, %v1426_v9 }
 0x67f   :  { %vm1431_vm9 = vcmp.gt.f32.partialorder %v1427_v10, 0.0  ;;  %v1433_v11 = vmul.f32 0.01, %v1427_v10 }
 0x681   :  { %v1435_v12 = vsel %vm1431_vm9, %v1427_v10, %v1433_v11 }
 0x682   :  { %1438 = vst.msk [vmem:[#allocation8] sm:$0xff] %vm1437_vm0, %v1435_v12 }
 0x684   :  { %v1428_v13 = vpop.f32.mrf.mxu0 }
 0x685   :  { %v1429_v14 = vadd.f32 %v1854_v8, %v1428_v13 }
 0x687   :  { %vm1432_vm11 = vcmp.gt.f32.partialorder %v1429_v14, 0.0  ;;  %v1434_v15 = vmul.f32 0.01, %v1429_v14 }
 0x689   :  { %v1436_v16 = vsel %vm1432_vm11, %v1429_v14, %v1434_v15 }
 0x68a   :  { %1439 = vst.msk [vmem:[#allocation8 + $0x8] sm:$0xff] %vm1437_vm0, %v1436_v16 }
 0x68b   :  { %1456 = dma.vmem_to_hbm [thread:$0]  %s1449_s9, 256, %s1451_s23, [#allocation4], %s2015_s2, %s2015_s2, %s2010_s27  }
 0x68c   :  { %2001 = dma.done.wait [#allocation4], 256  }
 0x68d   :  { %2002 = vsyncadd [#allocation4], 4294967040 }
 0x68e   :  { %2003 = dma.done.wait [#allocation10], 256  }
 0x68f   :  { %2004 = vsyncadd [#allocation10], 4294967040 }
 0x690   :  { %1482 = vsyncpa [#allocation3], 1 }
 0x691   :  { %1483 = vsyncpa [#allocation6], 1 }
 0x692   :  { %1484 = vsyncpa [#allocation4], 1 }
 0x693   :  { %1485 = vsyncpa [#allocation10], 1 }

</bundles_post_ra>
